<compile_context>
chip_gen: v6e
topology: v6e:2x2x1
jax: 0.10.0
libtpu: 0.0.40
codegen_flags: <defaults>
</compile_context>

<pallas_src>
import functools

import jax
import jax.numpy as jnp
from jax import lax
from jax.experimental import pallas as pl
from jax.experimental.pallas import tpu as pltpu


_SQRT_HALF = 0.7071067811865476
_SQRT_2_OVER_PI = 0.7978845608028654


def _round_up(n, m):
    return ((n + m - 1) // m) * m


def _choose_tile_b(batch, requested):
    """Pick the batch tile: as large as requested, but keep >=2 grid steps
    when the batch allows it (v7x megacore shards the grid across 2 TCs)."""
    tile = min(requested, _round_up(batch, 8))
    tile = max(8, (tile // 8) * 8)
    if pl.cdiv(batch, tile) < 2 and batch > 8:
        tile = max(8, _round_up(pl.cdiv(batch, 2), 8))
    return tile


def _mlp_ln_kernel(x_ref, w1_ref, b1_ref, w2_ref, b2_ref, g_ref, beta_ref,
                   o_ref, *, eps, approximate_gelu):
    # Two MXU matmuls (compute-dtype inputs, f32 accumulation) + GELU + LN.
    h = jnp.dot(x_ref[...], w1_ref[...], preferred_element_type=jnp.float32)
    h = h + b1_ref[...]                      # (1, H) broadcasts over batch rows

    if approximate_gelu:
        # tanh-approximate GELU routes the transcendental through the EUP.
        h = 0.5 * h * (1.0 + jnp.tanh(
            jnp.float32(_SQRT_2_OVER_PI) * (h + 0.044715 * h * h * h)))
    else:
        # exact erf GELU -- matches torch.nn.GELU() default numerics.
        h = 0.5 * h * (1.0 + lax.erf(h * jnp.float32(_SQRT_HALF)))

    # Second matmul: feed the MXU in the weights' (compute) dtype; f32 accum.
    y = jnp.dot(h.astype(w2_ref.dtype), w2_ref[...],
                preferred_element_type=jnp.float32)
    y = y + b2_ref[...]

    # LayerNorm over the feature dim (biased variance), stats in f32.
    mean = jnp.mean(y, axis=-1, keepdims=True)
    centered = y - mean
    var = jnp.mean(centered * centered, axis=-1, keepdims=True)
    y_hat = centered * lax.rsqrt(var + jnp.float32(eps))
    out = y_hat * g_ref[...] + beta_ref[...]

    o_ref[...] = out.astype(o_ref.dtype)


def audio_proj_forward(x, params, *, tile_b=128, eps=1e-5,
                       compute_dtype=jnp.bfloat16, approximate_gelu=False,
                       vmem_limit_bytes=64 * 1024 * 1024):
    """x: (B, clip_dim) -> (B, cross_dim), matching AudioProjmodel.forward."""
    w1, b1, w2, b2, gamma, beta = params
    B, d_in = x.shape
    hidden = w1.shape[1]
    d_out = w2.shape[1]
    out_dtype = x.dtype

    # MXU operands in the compute dtype; epilogue params in f32.
    xc = x.astype(compute_dtype)
    w1c = w1.astype(compute_dtype)
    w2c = w2.astype(compute_dtype)
    b1f = b1.reshape(1, hidden).astype(jnp.float32)
    b2f = b2.reshape(1, d_out).astype(jnp.float32)
    gf = gamma.reshape(1, d_out).astype(jnp.float32)
    betaf = beta.reshape(1, d_out).astype(jnp.float32)

    tb = _choose_tile_b(B, tile_b)
    B_pad = _round_up(B, tb)
    if B_pad != B:
        xc = jnp.pad(xc, ((0, B_pad - B), (0, 0)))
    grid = (B_pad // tb,)

    kernel = functools.partial(_mlp_ln_kernel, eps=eps,
                               approximate_gelu=approximate_gelu)

    itemsize = jnp.dtype(compute_dtype).itemsize
    cost = pl.CostEstimate(
        flops=2 * B_pad * (d_in * hidden + hidden * d_out),
        transcendentals=B_pad * hidden,
        bytes_accessed=(xc.size * itemsize
                        + w1c.size * itemsize + w2c.size * itemsize
                        + 4 * (b1f.size + b2f.size + gf.size + betaf.size)
                        + B_pad * d_out * jnp.dtype(out_dtype).itemsize),
    )

    def build(single_buffer_weights):
        if single_buffer_weights and hasattr(pl, "Buffered"):
            # Constant index_map: single-buffer the resident weights.
            w_kwargs = dict(pipeline_mode=pl.Buffered(1))
        else:
            w_kwargs = {}
        in_specs = [
            pl.BlockSpec((tb, d_in), lambda i: (i, 0)),                   # x
            pl.BlockSpec((d_in, hidden), lambda i: (0, 0), **w_kwargs),   # W1
            pl.BlockSpec((1, hidden), lambda i: (0, 0)),                  # b1
            pl.BlockSpec((hidden, d_out), lambda i: (0, 0), **w_kwargs),  # W2
            pl.BlockSpec((1, d_out), lambda i: (0, 0)),                   # b2
            pl.BlockSpec((1, d_out), lambda i: (0, 0)),                   # gamma
            pl.BlockSpec((1, d_out), lambda i: (0, 0)),                   # beta
        ]
        return pl.pallas_call(
            kernel,
            out_shape=jax.ShapeDtypeStruct((B_pad, d_out), out_dtype),
            grid_spec=pltpu.PrefetchScalarGridSpec(
                num_scalar_prefetch=0,
                grid=grid,
                in_specs=in_specs,
                out_specs=pl.BlockSpec((tb, d_out), lambda i: (i, 0)),
            ),
            compiler_params=pltpu.CompilerParams(
                dimension_semantics=("parallel",),
                vmem_limit_bytes=vmem_limit_bytes),
            cost_estimate=cost,
        )

    try:
        out = build(True)(xc, w1c, b1f, w2c, b2f, gf, betaf)
    except Exception:
        # Fallback for jax versions without pipeline_mode / Buffered(1):
        # default double-buffered weights (correct, just more VMEM).
        out = build(False)(xc, w1c, b1f, w2c, b2f, gf, betaf)

    return out[:B] if B_pad != B else out


def init_params(key, clip_dim, cross_dim, mult=4, dtype=jnp.float32):
    """Deterministic synthetic params mirroring the module's __init__ shapes."""
    hidden = clip_dim * mult
    k1, k2, k3, k4 = jax.random.split(key, 4)
    # Stored [in, out] (transpose of PyTorch's [out, in]) so the kernel does x @ W.
    w1 = jax.random.normal(k1, (clip_dim, hidden), dtype) * (1.0 / jnp.sqrt(clip_dim))
    b1 = jax.random.normal(k2, (1, hidden), dtype) * 0.01
    w2 = jax.random.normal(k3, (hidden, cross_dim), dtype) * (1.0 / jnp.sqrt(hidden))
    b2 = jax.random.normal(k4, (1, cross_dim), dtype) * 0.01
    gamma = jnp.ones((1, cross_dim), dtype)   # LayerNorm init: weight=1, bias=0
    beta = jnp.zeros((1, cross_dim), dtype)
    return (w1, b1, w2, b2, gamma, beta)


def reference_forward(x, params, *, eps=1e-5, compute_dtype=jnp.float32,
                      approximate_gelu=False):
    """Pure-JAX reference of the PyTorch forward with the same dtype policy."""
    w1, b1, w2, b2, gamma, beta = params
    h = jnp.dot(x.astype(compute_dtype), w1.astype(compute_dtype),
                preferred_element_type=jnp.float32) + b1.astype(jnp.float32)
    if approximate_gelu:
        h = 0.5 * h * (1.0 + jnp.tanh(_SQRT_2_OVER_PI * (h + 0.044715 * h ** 3)))
    else:
        h = 0.5 * h * (1.0 + lax.erf(h * _SQRT_HALF))
    y = jnp.dot(h.astype(compute_dtype), w2.astype(compute_dtype),
                preferred_element_type=jnp.float32) + b2.astype(jnp.float32)
    mean = jnp.mean(y, axis=-1, keepdims=True)
    var = jnp.mean((y - mean) ** 2, axis=-1, keepdims=True)
    out = ((y - mean) / jnp.sqrt(var + eps) * gamma.astype(jnp.float32)
           + beta.astype(jnp.float32))
    return out.astype(x.dtype)


if __name__ == "__main__":
    # Small shapes consistent with the module: clip_embeddings_dim=128,
    # cross_attention_dim=256, mult=4 -> hidden=512, batch=16.
    B, CLIP_DIM, CROSS_DIM = 16, 128, 256

    key = jax.random.PRNGKey(0)
    k_x, k_p = jax.random.split(key)
    x = jax.random.normal(k_x, (B, CLIP_DIM), jnp.float32)
    params = init_params(k_p, CLIP_DIM, CROSS_DIM)

    # Default fast path: bf16 MXU inputs, f32 accumulation, exact erf GELU.
    out = audio_proj_forward(x, params)
    out = jax.block_until_ready(out)
    assert out.shape == (B, CROSS_DIM)

    # Check against a dtype-matched JAX reference (same bf16 matmul policy).
    ref_bf16 = reference_forward(x, params, compute_dtype=jnp.bfloat16)
    assert jnp.allclose(out, ref_bf16, atol=2e-2, rtol=2e-2), \
        "mismatch vs dtype-matched (bf16 matmul) reference"

    # Loose sanity check against the full-f32 reference.
    ref_f32 = reference_forward(x, params, compute_dtype=jnp.float32)
    assert jnp.allclose(out, ref_f32, atol=1e-1, rtol=1e-1), \
        "mismatch vs f32 reference"

    # Also exercise the full-precision path (exact torch.nn.GELU semantics).
    out_f32 = audio_proj_forward(x, params, compute_dtype=jnp.float32)
    out_f32 = jax.block_until_ready(out_f32)
    assert jnp.allclose(out_f32, ref_f32, atol=1e-4, rtol=1e-4), \
        "mismatch vs f32 reference (f32 kernel path)"

    print("KERNEL_OK")
</pallas_src>

<mosaic_0001>
module attributes {stable_mosaic.version = 11 : i64} {
  func.func @_mlp_ln_kernel(%arg0: i32, %arg1: memref<8x128xbf16, #tpu.memory_space<vmem>>, %arg2: memref<128x512xbf16, #tpu.memory_space<vmem>>, %arg3: memref<1x512xf32, #tpu.memory_space<vmem>>, %arg4: memref<512x256xbf16, #tpu.memory_space<vmem>>, %arg5: memref<1x256xf32, #tpu.memory_space<vmem>>, %arg6: memref<1x256xf32, #tpu.memory_space<vmem>>, %arg7: memref<1x256xf32, #tpu.memory_space<vmem>>, %arg8: memref<8x256xf32, #tpu.memory_space<vmem>>) attributes {dimension_semantics = [#tpu.dimension_semantics<parallel>], iteration_bounds = array<i64: 2>, scalar_prefetch = 0 : i64, scratch_operands = 0 : i64, tpu.core_type = #tpu.core_type<tc>, window_params = [{transform_indices = @transform_0, window_bounds = array<i64: 8, 128>}, {pipeline_mode = #tpu.pipeline_mode<synchronous>, transform_indices = @transform_1, window_bounds = array<i64: 128, 512>}, {pipeline_mode = #tpu.pipeline_mode<synchronous>, transform_indices = @transform_2, window_bounds = array<i64: 1, 512>}, {pipeline_mode = #tpu.pipeline_mode<synchronous>, transform_indices = @transform_3, window_bounds = array<i64: 512, 256>}, {pipeline_mode = #tpu.pipeline_mode<synchronous>, transform_indices = @transform_4, window_bounds = array<i64: 1, 256>}, {pipeline_mode = #tpu.pipeline_mode<synchronous>, transform_indices = @transform_5, window_bounds = array<i64: 1, 256>}, {pipeline_mode = #tpu.pipeline_mode<synchronous>, transform_indices = @transform_6, window_bounds = array<i64: 1, 256>}, {transform_indices = @transform_7, window_bounds = array<i64: 8, 256>}]} {
    %c0 = arith.constant 0 : index
    %c0_0 = arith.constant 0 : index
    %0 = vector.load %arg1[%c0, %c0_0] : memref<8x128xbf16, #tpu.memory_space<vmem>>, vector<8x128xbf16>
    %c0_1 = arith.constant 0 : index
    %c0_2 = arith.constant 0 : index
    %1 = vector.load %arg2[%c0_1, %c0_2] : memref<128x512xbf16, #tpu.memory_space<vmem>>, vector<128x512xbf16>
    %cst = arith.constant dense<0.000000e+00> : vector<8x512xf32>
    %2 = tpu.matmul %0, %1, %cst {dimension_numbers = #tpu.dot_dimension_numbers<[1], [0], [0], [1], [0, 0, 1, 1], [], []>} : vector<8x128xbf16>, vector<128x512xbf16>, vector<8x512xf32> -> vector<8x512xf32>
    %c0_3 = arith.constant 0 : index
    %c0_4 = arith.constant 0 : index
    %3 = vector.load %arg3[%c0_3, %c0_4] : memref<1x512xf32, #tpu.memory_space<vmem>>, vector<1x512xf32>
    %4 = vector.broadcast %3 : vector<1x512xf32> to vector<8x512xf32>
    %5 = arith.addf %2, %4 : vector<8x512xf32>
    %cst_5 = arith.constant 5.000000e-01 : f32
    %6 = vector.broadcast %cst_5 : f32 to vector<8x512xf32>
    %7 = arith.mulf %6, %5 : vector<8x512xf32>
    %cst_6 = arith.constant 0.707106769 : f32
    %8 = vector.broadcast %cst_6 : f32 to vector<8x512xf32>
    %9 = arith.mulf %5, %8 : vector<8x512xf32>
    %10 = math.erf %9 : vector<8x512xf32>
    %cst_7 = arith.constant 1.000000e+00 : f32
    %11 = vector.broadcast %cst_7 : f32 to vector<8x512xf32>
    %12 = arith.addf %11, %10 : vector<8x512xf32>
    %13 = arith.mulf %7, %12 : vector<8x512xf32>
    %14 = arith.truncf %13 : vector<8x512xf32> to vector<8x512xbf16>
    %c0_8 = arith.constant 0 : index
    %c0_9 = arith.constant 0 : index
    %15 = vector.load %arg4[%c0_8, %c0_9] : memref<512x256xbf16, #tpu.memory_space<vmem>>, vector<512x256xbf16>
    %cst_10 = arith.constant dense<0.000000e+00> : vector<8x256xf32>
    %16 = tpu.matmul %14, %15, %cst_10 {dimension_numbers = #tpu.dot_dimension_numbers<[1], [0], [0], [1], [0, 0, 1, 1], [], []>} : vector<8x512xbf16>, vector<512x256xbf16>, vector<8x256xf32> -> vector<8x256xf32>
    %c0_11 = arith.constant 0 : index
    %c0_12 = arith.constant 0 : index
    %17 = vector.load %arg5[%c0_11, %c0_12] : memref<1x256xf32, #tpu.memory_space<vmem>>, vector<1x256xf32>
    %18 = vector.broadcast %17 : vector<1x256xf32> to vector<8x256xf32>
    %19 = arith.addf %16, %18 : vector<8x256xf32>
    %cst_13 = arith.constant dense<0.000000e+00> : vector<8xf32>
    %20 = vector.multi_reduction <add>, %19, %cst_13 [1] : vector<8x256xf32> to vector<8xf32>
    %21 = vector.shape_cast %20 : vector<8xf32> to vector<8x1xf32>
    %cst_14 = arith.constant 2.560000e+02 : f32
    %22 = vector.broadcast %cst_14 : f32 to vector<8x1xf32>
    %23 = arith.divf %21, %22 : vector<8x1xf32>
    %24 = vector.broadcast %23 : vector<8x1xf32> to vector<8x256xf32>
    %25 = arith.subf %19, %24 : vector<8x256xf32>
    %26 = arith.mulf %25, %25 : vector<8x256xf32>
    %cst_15 = arith.constant dense<0.000000e+00> : vector<8xf32>
    %27 = vector.multi_reduction <add>, %26, %cst_15 [1] : vector<8x256xf32> to vector<8xf32>
    %28 = vector.shape_cast %27 : vector<8xf32> to vector<8x1xf32>
    %cst_16 = arith.constant 2.560000e+02 : f32
    %29 = vector.broadcast %cst_16 : f32 to vector<8x1xf32>
    %30 = arith.divf %28, %29 : vector<8x1xf32>
    %cst_17 = arith.constant 9.99999974E-6 : f32
    %31 = vector.broadcast %cst_17 : f32 to vector<8x1xf32>
    %32 = arith.addf %30, %31 : vector<8x1xf32>
    %33 = math.rsqrt %32 : vector<8x1xf32>
    %34 = vector.broadcast %33 : vector<8x1xf32> to vector<8x256xf32>
    %35 = arith.mulf %25, %34 : vector<8x256xf32>
    %c0_18 = arith.constant 0 : index
    %c0_19 = arith.constant 0 : index
    %36 = vector.load %arg6[%c0_18, %c0_19] : memref<1x256xf32, #tpu.memory_space<vmem>>, vector<1x256xf32>
    %37 = vector.broadcast %36 : vector<1x256xf32> to vector<8x256xf32>
    %38 = arith.mulf %35, %37 : vector<8x256xf32>
    %c0_20 = arith.constant 0 : index
    %c0_21 = arith.constant 0 : index
    %39 = vector.load %arg7[%c0_20, %c0_21] : memref<1x256xf32, #tpu.memory_space<vmem>>, vector<1x256xf32>
    %40 = vector.broadcast %39 : vector<1x256xf32> to vector<8x256xf32>
    %41 = arith.addf %38, %40 : vector<8x256xf32>
    %c0_22 = arith.constant 0 : index
    %c0_23 = arith.constant 0 : index
    %42 = vector.load %arg8[%c0_22, %c0_23] : memref<8x256xf32, #tpu.memory_space<vmem>>, vector<8x256xf32>
    tpu.vector_store %arg8[%c0_22, %c0_23], %41 {strides = array<i32>} : memref<8x256xf32, #tpu.memory_space<vmem>>, vector<8x256xf32>,
    return
  }
  func.func @transform_0(%arg0: i32) -> (i32, i32) {
    %c0_i32 = arith.constant 0 : i32
    %c0_i32_0 = arith.constant 0 : i32
    return %arg0, %c0_i32 : i32, i32
  }
  func.func @transform_1(%arg0: i32) -> (i32, i32) {
    %c0_i32 = arith.constant 0 : i32
    %c0_i32_0 = arith.constant 0 : i32
    %c0_i32_1 = arith.constant 0 : i32
    return %c0_i32, %c0_i32_0 : i32, i32
  }
  func.func @transform_2(%arg0: i32) -> (i32, i32) {
    %c0_i32 = arith.constant 0 : i32
    %c0_i32_0 = arith.constant 0 : i32
    %c0_i32_1 = arith.constant 0 : i32
    return %c0_i32, %c0_i32_0 : i32, i32
  }
  func.func @transform_3(%arg0: i32) -> (i32, i32) {
    %c0_i32 = arith.constant 0 : i32
    %c0_i32_0 = arith.constant 0 : i32
    %c0_i32_1 = arith.constant 0 : i32
    return %c0_i32, %c0_i32_0 : i32, i32
  }
  func.func @transform_4(%arg0: i32) -> (i32, i32) {
    %c0_i32 = arith.constant 0 : i32
    %c0_i32_0 = arith.constant 0 : i32
    %c0_i32_1 = arith.constant 0 : i32
    return %c0_i32, %c0_i32_0 : i32, i32
  }
  func.func @transform_5(%arg0: i32) -> (i32, i32) {
    %c0_i32 = arith.constant 0 : i32
    %c0_i32_0 = arith.constant 0 : i32
    %c0_i32_1 = arith.constant 0 : i32
    return %c0_i32, %c0_i32_0 : i32, i32
  }
  func.func @transform_6(%arg0: i32) -> (i32, i32) {
    %c0_i32 = arith.constant 0 : i32
    %c0_i32_0 = arith.constant 0 : i32
    %c0_i32_1 = arith.constant 0 : i32
    return %c0_i32, %c0_i32_0 : i32, i32
  }
  func.func @transform_7(%arg0: i32) -> (i32, i32) {
    %c0_i32 = arith.constant 0 : i32
    %c0_i32_0 = arith.constant 0 : i32
    return %arg0, %c0_i32 : i32, i32
  }
}

module attributes {stable_mosaic.version = 11 : i64} {
  func.func @_mlp_ln_kernel(%arg0: i32, %arg1: memref<8x128xbf16, #tpu.memory_space<vmem>>, %arg2: memref<128x512xbf16, #tpu.memory_space<vmem>>, %arg3: memref<1x512xf32, #tpu.memory_space<vmem>>, %arg4: memref<512x256xbf16, #tpu.memory_space<vmem>>, %arg5: memref<1x256xf32, #tpu.memory_space<vmem>>, %arg6: memref<1x256xf32, #tpu.memory_space<vmem>>, %arg7: memref<1x256xf32, #tpu.memory_space<vmem>>, %arg8: memref<8x256xf32, #tpu.memory_space<vmem>>) attributes {dimension_semantics = [#tpu.dimension_semantics<parallel>], iteration_bounds = array<i64: 2>, scalar_prefetch = 0 : i64, scratch_operands = 0 : i64, tpu.core_type = #tpu.core_type<tc>, window_params = [{transform_indices = @transform_0, window_bounds = array<i64: 8, 128>}, {pipeline_mode = #tpu.pipeline_mode<synchronous>, transform_indices = @transform_1, window_bounds = array<i64: 128, 512>}, {pipeline_mode = #tpu.pipeline_mode<synchronous>, transform_indices = @transform_2, window_bounds = array<i64: 1, 512>}, {pipeline_mode = #tpu.pipeline_mode<synchronous>, transform_indices = @transform_3, window_bounds = array<i64: 512, 256>}, {pipeline_mode = #tpu.pipeline_mode<synchronous>, transform_indices = @transform_4, window_bounds = array<i64: 1, 256>}, {pipeline_mode = #tpu.pipeline_mode<synchronous>, transform_indices = @transform_5, window_bounds = array<i64: 1, 256>}, {pipeline_mode = #tpu.pipeline_mode<synchronous>, transform_indices = @transform_6, window_bounds = array<i64: 1, 256>}, {transform_indices = @transform_7, window_bounds = array<i64: 8, 256>}]} {
    %c0 = arith.constant 0 : index
    %c0_0 = arith.constant 0 : index
    %0 = vector.load %arg1[%c0, %c0_0] : memref<8x128xbf16, #tpu.memory_space<vmem>>, vector<8x128xbf16>
    %c0_1 = arith.constant 0 : index
    %c0_2 = arith.constant 0 : index
    %1 = vector.load %arg2[%c0_1, %c0_2] : memref<128x512xbf16, #tpu.memory_space<vmem>>, vector<128x512xbf16>
    %cst = arith.constant dense<0.000000e+00> : vector<8x512xf32>
    %2 = tpu.matmul %0, %1, %cst {dimension_numbers = #tpu.dot_dimension_numbers<[1], [0], [0], [1], [0, 0, 1, 1], [], []>} : vector<8x128xbf16>, vector<128x512xbf16>, vector<8x512xf32> -> vector<8x512xf32>
    %c0_3 = arith.constant 0 : index
    %c0_4 = arith.constant 0 : index
    %3 = vector.load %arg3[%c0_3, %c0_4] : memref<1x512xf32, #tpu.memory_space<vmem>>, vector<1x512xf32>
    %4 = vector.broadcast %3 : vector<1x512xf32> to vector<8x512xf32>
    %5 = arith.addf %2, %4 : vector<8x512xf32>
    %cst_5 = arith.constant 5.000000e-01 : f32
    %6 = vector.broadcast %cst_5 : f32 to vector<8x512xf32>
    %7 = arith.mulf %6, %5 : vector<8x512xf32>
    %cst_6 = arith.constant 0.707106769 : f32
    %8 = vector.broadcast %cst_6 : f32 to vector<8x512xf32>
    %9 = arith.mulf %5, %8 : vector<8x512xf32>
    %10 = math.erf %9 : vector<8x512xf32>
    %cst_7 = arith.constant 1.000000e+00 : f32
    %11 = vector.broadcast %cst_7 : f32 to vector<8x512xf32>
    %12 = arith.addf %11, %10 : vector<8x512xf32>
    %13 = arith.mulf %7, %12 : vector<8x512xf32>
    %14 = arith.truncf %13 : vector<8x512xf32> to vector<8x512xbf16>
    %c0_8 = arith.constant 0 : index
    %c0_9 = arith.constant 0 : index
    %15 = vector.load %arg4[%c0_8, %c0_9] : memref<512x256xbf16, #tpu.memory_space<vmem>>, vector<512x256xbf16>
    %cst_10 = arith.constant dense<0.000000e+00> : vector<8x256xf32>
    %16 = tpu.matmul %14, %15, %cst_10 {dimension_numbers = #tpu.dot_dimension_numbers<[1], [0], [0], [1], [0, 0, 1, 1], [], []>} : vector<8x512xbf16>, vector<512x256xbf16>, vector<8x256xf32> -> vector<8x256xf32>
    %c0_11 = arith.constant 0 : index
    %c0_12 = arith.constant 0 : index
    %17 = vector.load %arg5[%c0_11, %c0_12] : memref<1x256xf32, #tpu.memory_space<vmem>>, vector<1x256xf32>
    %18 = vector.broadcast %17 : vector<1x256xf32> to vector<8x256xf32>
    %19 = arith.addf %16, %18 : vector<8x256xf32>
    %cst_13 = arith.constant dense<0.000000e+00> : vector<8xf32>
    %20 = vector.multi_reduction <add>, %19, %cst_13 [1] : vector<8x256xf32> to vector<8xf32>
    %21 = vector.shape_cast %20 : vector<8xf32> to vector<8x1xf32>
    %cst_14 = arith.constant 2.560000e+02 : f32
    %22 = vector.broadcast %cst_14 : f32 to vector<8x1xf32>
    %23 = arith.divf %21, %22 : vector<8x1xf32>
    %24 = vector.broadcast %23 : vector<8x1xf32> to vector<8x256xf32>
    %25 = arith.subf %19, %24 : vector<8x256xf32>
    %26 = arith.mulf %25, %25 : vector<8x256xf32>
    %cst_15 = arith.constant dense<0.000000e+00> : vector<8xf32>
    %27 = vector.multi_reduction <add>, %26, %cst_15 [1] : vector<8x256xf32> to vector<8xf32>
    %28 = vector.shape_cast %27 : vector<8xf32> to vector<8x1xf32>
    %cst_16 = arith.constant 2.560000e+02 : f32
    %29 = vector.broadcast %cst_16 : f32 to vector<8x1xf32>
    %30 = arith.divf %28, %29 : vector<8x1xf32>
    %cst_17 = arith.constant 9.99999974E-6 : f32
    %31 = vector.broadcast %cst_17 : f32 to vector<8x1xf32>
    %32 = arith.addf %30, %31 : vector<8x1xf32>
    %33 = math.rsqrt %32 : vector<8x1xf32>
    %34 = vector.broadcast %33 : vector<8x1xf32> to vector<8x256xf32>
    %35 = arith.mulf %25, %34 : vector<8x256xf32>
    %c0_18 = arith.constant 0 : index
    %c0_19 = arith.constant 0 : index
    %36 = vector.load %arg6[%c0_18, %c0_19] : memref<1x256xf32, #tpu.memory_space<vmem>>, vector<1x256xf32>
    %37 = vector.broadcast %36 : vector<1x256xf32> to vector<8x256xf32>
    %38 = arith.mulf %35, %37 : vector<8x256xf32>
    %c0_20 = arith.constant 0 : index
    %c0_21 = arith.constant 0 : index
    %39 = vector.load %arg7[%c0_20, %c0_21] : memref<1x256xf32, #tpu.memory_space<vmem>>, vector<1x256xf32>
    %40 = vector.broadcast %39 : vector<1x256xf32> to vector<8x256xf32>
    %41 = arith.addf %38, %40 : vector<8x256xf32>
    %c0_22 = arith.constant 0 : index
    %c0_23 = arith.constant 0 : index
    %42 = vector.load %arg8[%c0_22, %c0_23] : memref<8x256xf32, #tpu.memory_space<vmem>>, vector<8x256xf32>
    tpu.vector_store %arg8[%c0_22, %c0_23], %41 {strides = array<i32>} : memref<8x256xf32, #tpu.memory_space<vmem>>, vector<8x256xf32>,
    return
  }
  func.func @transform_0(%arg0: i32) -> (i32, i32) {
    %c0_i32 = arith.constant 0 : i32
    %c0_i32_0 = arith.constant 0 : i32
    return %arg0, %c0_i32 : i32, i32
  }
  func.func @transform_1(%arg0: i32) -> (i32, i32) {
    %c0_i32 = arith.constant 0 : i32
    %c0_i32_0 = arith.constant 0 : i32
    %c0_i32_1 = arith.constant 0 : i32
    return %c0_i32, %c0_i32_0 : i32, i32
  }
  func.func @transform_2(%arg0: i32) -> (i32, i32) {
    %c0_i32 = arith.constant 0 : i32
    %c0_i32_0 = arith.constant 0 : i32
    %c0_i32_1 = arith.constant 0 : i32
    return %c0_i32, %c0_i32_0 : i32, i32
  }
  func.func @transform_3(%arg0: i32) -> (i32, i32) {
    %c0_i32 = arith.constant 0 : i32
    %c0_i32_0 = arith.constant 0 : i32
    %c0_i32_1 = arith.constant 0 : i32
    return %c0_i32, %c0_i32_0 : i32, i32
  }
  func.func @transform_4(%arg0: i32) -> (i32, i32) {
    %c0_i32 = arith.constant 0 : i32
    %c0_i32_0 = arith.constant 0 : i32
    %c0_i32_1 = arith.constant 0 : i32
    return %c0_i32, %c0_i32_0 : i32, i32
  }
  func.func @transform_5(%arg0: i32) -> (i32, i32) {
    %c0_i32 = arith.constant 0 : i32
    %c0_i32_0 = arith.constant 0 : i32
    %c0_i32_1 = arith.constant 0 : i32
    return %c0_i32, %c0_i32_0 : i32, i32
  }
  func.func @transform_6(%arg0: i32) -> (i32, i32) {
    %c0_i32 = arith.constant 0 : i32
    %c0_i32_0 = arith.constant 0 : i32
    %c0_i32_1 = arith.constant 0 : i32
    return %c0_i32, %c0_i32_0 : i32, i32
  }
  func.func @transform_7(%arg0: i32) -> (i32, i32) {
    %c0_i32 = arith.constant 0 : i32
    %c0_i32_0 = arith.constant 0 : i32
    return %arg0, %c0_i32 : i32, i32
  }
}

</mosaic_0001>

<bundles_post_ra>
// kernel: tpu_custom_call.1
= control target key start
LH: loop header
LB: loop body
LE: loop exit
PB: predicated region body
PF: predicated region fallthrough
CT: control target
= control target key end

     0   :  { %s2087_s0 = inlined_call_operand.hbm [shape: bf16[16,128], index: 0, kind: input, shape index: {}]   ;;  %s2088_s1 = inlined_call_operand.hbm [shape: bf16[128,512], index: 1, kind: input, shape index: {}]   ;;  %s2089_s2 = inlined_call_operand.hbm [shape: f32[1,512], index: 2, kind: input, shape index: {}]   ;;  %s2090_s3 = inlined_call_operand.hbm [shape: bf16[512,256], index: 3, kind: input, shape index: {}]   ;;  %s2091_s4 = inlined_call_operand.vmem [shape: f32[1,256], index: 4, kind: input, shape index: {}]   ;;  %s2092_s5 = inlined_call_operand.vmem [shape: f32[1,256], index: 5, kind: input, shape index: {}]   ;;  %s2093_s6 = inlined_call_operand.vmem [shape: f32[1,256], index: 6, kind: input, shape index: {}]   ;;  %s2094_s7 = inlined_call_operand.hbm [shape: f32[16,256], index: 7, kind: output, shape index: {}]  }
   0x1   :  { %2099 = sst [smem:[#allocation15_spill]] %s2088_s1 }
   0x2   :  { %2100 = sst [smem:[#allocation16_spill]] %s2089_s2 }
   0x3   :  { %12 = vsyncpa [#allocation3], 0 }
   0x4   :  { %14 = vsyncpa [#allocation3 + $0x1], 0 }
   0x5   :  { %15 = vsyncpa [#allocation6], 0 }
   0x6   :  { %16 = vsyncpa [#allocation9], 0 }
   0x7   :  { %17 = vsyncpa [#allocation4], 0 }
   0x8   :  { %19 = vsyncpa [#allocation4 + $0x1], 0  ;;  %s1879_s24 = smov 0   ;;  %s1881_s25 = smov 0  }
   0x9   :  { %s1883_s26 = smov 0   ;;  %s1885_s27 = smov 0  }
   0xa LB: > { %s1900_s28 = sadd.s32 4294967295, %s1827_s27   ;;  %s1297_s29 = sadd.s32 4294967294, %s1827_s27   ;;  %s1827_s27 = sphi %s1885_s27, %s2122_s27   ;;  %s1823_s26 = sphi %s1883_s26, %s2121_s26   ;;  %s1819_s25 = sphi %s1881_s25, %s2120_s25   ;;  %s1815_s24 = sphi %s1879_s24, %s2119_s24  }
   0xb   : > { %p45_p0 = scmp.ne.s32.totalorder %s1819_s25, %s1815_s24  ;;  %p2095_p1 = scmp.eq.s32.totalorder %s1900_s28, 0 }
   0xc   : > { %p201_p3 = scmp.eq.s32.totalorder %s1297_s29, 1  ;;  %p1298_p5 = scmp.ge.s32.totalorder %s1827_s27, 1 }
   0xd   : > { %p1909_p4 = por %p2095_p1, %p45_p0  ;;  %p208_p7 = scmp.lt.s32.totalorder %s1827_s27, 3 }
   0xe   : > { %p1914_p6 = por %p201_p3, %p45_p0  ;;  %s1829_s10 = smov [#allocation5]  }
   0xf   : > { %s2101_s30 = scalar_select %p1909_p4, 1, 0 }
  0x10   : > { %s2102_s8 = scalar_select %p1914_p6, 1, 0 }
  0x11   : > { %p1919_p8 = pnand %p1298_p5, %p208_p7  ;;  %s220_s11 = sshll.u32 %s1829_s10, 4  ;;  %s221_s11 = int_to_ptr.vmem [resolvable:$true] %s220_s11 }
  0x12   : > { %s1830_s13 = smov [#allocation7]   ;;  %s1831_s15 = smov [#allocation8]  }
  0x13   : > { %s2103_s9 = scalar_select %p1919_p8, 1, 0 }
  0x14   : > { %p1429_p9 = pneg %p1919_p8  ;;  %s234_s14 = sshll.u32 %s1830_s13, 4  ;;  %s235_s14 = int_to_ptr.vmem [resolvable:$true] %s234_s14 }
  0x15   : > { %s244_s16 = sshll.u32 %s1831_s15, 4  ;;  %s1660_s17 = scalar_lea.vmem %s221_s11, 4096  ;;  %s245_s16 = int_to_ptr.vmem [resolvable:$true] %s244_s16 }
  0x16   : > { %p1928_p11 = pnand %p1429_p9, %p2095_p1  ;;  %p1661_p13 = scmp.ne.s32.totalorder %s221_s11, %s1660_s17 }
  0x17   : > { %p1668_p5 = scmp.lt.s32.totalorder %s221_s11, %s221_s11  ;;  %p1669_p7 = scmp.lt.s32.totalorder %s1660_s17, %s1660_s17 }
  0x18   : > { %p1651_p12 = pneg %p1928_p11 }
  0x19   : > { %p1670_p9 = por %p1669_p7, %p1668_p5 }
  0x1a   : > { %p1663_p0 = pnand %p1661_p13, %p1651_p12 }
  0x1c   : > { %p1664_p3 = pneg %p1663_p0 }
  0x1e   : > { %p1671_p10 = pnand %p1670_p9, %p1664_p3 }
  0x20   : > { %1674 = shalt.err (!%p1671_p10)
}
  0x21   : > { %s1832_s18 = smov 256   ;;  %s1833_s19 = smov 16  }
  0x22   : > { %s2105_s1 = sld [smem:[#allocation15_spill]]  ;;  %s1686_s22 = scalar_lea.vmem %s235_s14, 64 }
  0x23   : > { %p1687_p1 = scmp.ne.s32.totalorder %s235_s14, %s1686_s22  ;;  %p1694_p2 = scmp.lt.s32.totalorder %s235_s14, %s235_s14 }
  0x24   : > { %p1695_p6 = scmp.lt.s32.totalorder %s1686_s22, %s1686_s22 }
  0x25   : > { %p1689_p13 = pnand %p1687_p1, %p1651_p12 }
  0x26   : > { %p1696_p5 = por %p1695_p6, %p1694_p2 }
  0x27   : > { %p1690_p0 = pneg %p1689_p13 }
  0x28   : > { %1432 = dma.hbm_to_vmem [thread:$0]  (!%p1928_p11), %s2105_s1, 4096, %s221_s11, [#allocation6], %s1832_s18, %s1832_s18, %s1833_s19  }
  0x29   : > { %p1697_p3 = pnand %p1696_p5, %p1690_p0 }
  0x2b   : > { %1700 = shalt.err (!%p1697_p3)
}
  0x2c   : > { %s2106_s2 = sld [smem:[#allocation16_spill]]  ;;  %s1712_s10 = scalar_lea.vmem %s245_s16, 8192 }
  0x2d   : > { %p1713_p10 = scmp.ne.s32.totalorder %s245_s16, %s1712_s10  ;;  %p1720_p9 = scmp.lt.s32.totalorder %s245_s16, %s245_s16 }
  0x2e   : > { %p1721_p13 = scmp.lt.s32.totalorder %s1712_s10, %s1712_s10 }
  0x2f   : > { %p1715_p7 = pnand %p1713_p10, %p1651_p12 }
  0x30   : > { %p1722_p4 = por %p1721_p13, %p1720_p9 }
  0x31   : > { %p1716_p1 = pneg %p1715_p7 }
  0x32   : > { %1435 = dma.hbm_to_vmem [thread:$0]  (!%p1928_p11), %s2106_s2, 64, %s235_s14, [#allocation6]  }
  0x33   : > { %p1723_p2 = pnand %p1722_p4, %p1716_p1 }
  0x35   : > { %1726 = shalt.err (!%p1723_p2)
}
  0x36   : > { %s1834_s11 = smov 128   ;;  %s1835_s13 = smov 8  }
  0x37   : > { %1438 = dma.hbm_to_vmem [thread:$0]  (!%p1928_p11), %s2090_s3, 8192, %s245_s16, [#allocation9], %s1834_s11, %s1834_s11, %s1835_s13  }
  0x38   : > { %s1959_s17 = sadd.s32 1, %s1827_s27   ;;  %s32_s19 = sadd.s32 1, %s1823_s26 }
  0x39   : > { %s29_s18 = ssub.s32 %s1827_s27, %s1959_s17  ;;  %p39_p6 = scmp.ne.s32.totalorder %s1823_s26, %s1819_s25 }
  0x3a   : > { %p30_p4 = scmp.eq.s32.totalorder %s29_s18, 0  ;;  %p40_p12 = scmp.eq.s32.totalorder %s1827_s27, 0 }
  0x3b   : > { %p1450_p0 = scmp.lt.s32.totalorder %s1827_s27, 2  ;;  %p2107_p3 = scmp.eq.s32.totalorder %s1900_s28, 1 }
  0x3c   : > { %s1969_s20 = scalar_select %p30_p4, %s1823_s26, %s32_s19  }
  0x3d   : > { %p41_p5 = por %p40_p12, %p39_p6  ;;  %p1973_p10 = por %p2107_p3, %p39_p6 }
  0x3e   : > { %s267_s12 = sand.u32 1, %s1823_s26   ;;  %s1304_s22 = sshll.u32 %s1827_s27, 6 }
  0x3f   : > { %s2108_s21 = scalar_select %p1973_p10, 1, 0 }
  0x40   : > { %s1303_s16 = sshll.u32 %s267_s12, 2  ;;  %s1982_s10 = scalar_lea.hbm %s2087_s0, %s1304_s22 }
  0x41   : > { %s271_s11 = scalar_lea.vmem [#allocation2], %s1303_s16  ;;  %p1984_p11 = pnand %p1450_p0, %p41_p5 }
  0x42   : > { %s278_s13 = sshll.u32 %s271_s11, 4  ;;  %s268_s15 = scalar_lea.sflag [#allocation3], %s267_s12  ;;  %s279_s13 = int_to_ptr.vmem [resolvable:$true] %s278_s13 }
  0x43   : > { %s1727_s18 = scalar_lea.hbm %s1982_s10, 64  ;;  %p1729_p1 = pneg %p1984_p11 }
  0x44   : > { %p1728_p7 = scmp.ne.s32.totalorder %s1982_s10, %s1727_s18  ;;  %s1732_s23 = scalar_lea.hbm %s2087_s0, 128 }
  0x45   : > { %p1733_p2 = scmp.lt.s32.totalorder %s1982_s10, %s2087_s0  ;;  %p1734_p4 = scmp.lt.s32.totalorder %s1732_s23, %s1727_s18 }
  0x46   : > { %p1730_p9 = pnand %p1729_p1, %p1728_p7 }
  0x47   : > { %p1735_p6 = por %p1734_p4, %p1733_p2 }
  0x48   : > { %p1731_p13 = pneg %p1730_p9 }
  0x4a   : > { %p1736_p12 = pnand %p1735_p6, %p1731_p13 }
  0x4c   : > { %1739 = shalt.err (!%p1736_p12)
}
  0x4d   : > { %s1740_s11 = scalar_lea.vmem %s279_s13, 64  ;;  %s1836_s12 = smov [#allocation2]  }
  0x4e   : > { %p1741_p0 = scmp.ne.s32.totalorder %s279_s13, %s1740_s11  ;;  %s1745_s1 = sshll.u32 %s1836_s12, 4  ;;  %s1746_s1 = int_to_ptr.vmem [resolvable:$false] %s1745_s1 }
  0x4f   : > { %s1747_s2 = scalar_lea.vmem %s1746_s1, 128  ;;  %p1748_p7 = scmp.lt.s32.totalorder %s279_s13, %s1746_s1 }
  0x50   : > { %p1743_p5 = pnand %p1741_p0, %p1729_p1  ;;  %p1749_p9 = scmp.lt.s32.totalorder %s1747_s2, %s1740_s11 }
  0x52   : > { %p1744_p3 = pneg %p1743_p5  ;;  %p1750_p10 = por %p1749_p9, %p1748_p7 }
  0x54   : > { %p1751_p8 = pnand %p1750_p10, %p1744_p3 }
  0x56   : > { %1754 = shalt.err (!%p1751_p8)
}
  0x57   : > { %1442 = dma.hbm_to_vmem [thread:$0]  (!%p1984_p11), %s1982_s10, 64, %s279_s13, %s268_s15  }
  0x58   : > { %p2110_p13 = scmp.ne.s32.totalorder %s2103_s9, 0 }
  0x59   : > { %s2005_s18 = sand.u32 (!%p2110_p13), 1, %s1819_s25   ;;  %p2111_p1 = scmp.ne.s32.totalorder (!%p2110_p13), %s2101_s30, 0 }
  0x5a   : > { %287 = sbr.rel (%p2110_p13) target bundleno = 878 (0x36e), region = 48  ;;  %s1306_s19 = sshll.u32 (!%p2110_p13), %s2005_s18, 2 }
  0x5b   : > { %s290_s22 = scalar_lea.sflag (!%p2110_p13), [#allocation3], %s2005_s18  ;;  %s2009_s1 = scalar_lea.vmem (!%p2110_p13), [#allocation2], %s1306_s19 }
  0x5f   : > { %1798 = dma.done.wait (%p2111_p1), %s290_s22, 64  }
  0x60   : > { %1800 = vsyncadd (%p2111_p1), %s290_s22, 4294967232  ;;  %p2112_p8 = scmp.eq.s32.totalorder %s1900_s28, 0 }
  0x62   : > { %1802 = dma.done.wait (%p2112_p8), [#allocation6], 4160   ;;  %p2113_p10 = pmov %p2112_p8 }
  0x63   : > { %p2114_p11 = pmov %p2112_p8 }
  0x64   : > { %1804 = vsyncadd (%p2113_p10), [#allocation6], 4294963136 }
  0x65   : > { %1806 = dma.done.wait (%p2114_p11), [#allocation9], 8192   ;;  %p2115_p2 = pmov %p2112_p8 }
  0x66   : > { %v1837_v0 = vmov 0   ;;  %v1495_v1 = vld [vmem:[#allocation5 + $0xe4] ss:$16 sps:$4 sm:$0xff]   ;;  %v1497_v2 = vld [vmem:[#allocation5 + $0xec] ss:$16 sps:$4 sm:$0xff]   ;;  %s1310_s9 = sshll.u32 %s2005_s18, 4 }
  0x67   : > { %1808 = vsyncadd (%p2115_p2), [#allocation9], 4294959104  ;;  %584 = vmatprep.mubr.bf16.mxu0 %v1837_v0  ;;  %625 = vmatprep.mubr.bf16.mxu1 %v1837_v0  ;;  %v1499_v3 = vld [vmem:[#allocation5 + $0xe0] ss:$16 sps:$4 sm:$0xff]   ;;  %v1500_v4 = vld [vmem:[#allocation5 + $0xe8] ss:$16 sps:$4 sm:$0xff]  }
  0x68   : > { %552 = vmatprep.subr.bf16.mxu0 %v1495_v1  ;;  %593 = vmatprep.subr.bf16.mxu1 %v1497_v2  ;;  %v1501_v5 = vld [vmem:[#allocation5 + $0xc4] ss:$16 sps:$4 sm:$0xff]   ;;  %v1503_v6 = vld [vmem:[#allocation5 + $0xcc] ss:$16 sps:$4 sm:$0xff]   ;;  %v1505_v7 = vld [vmem:[#allocation5 + $0xc0] ss:$16 sps:$4 sm:$0xff]  }
  0x69   : > { %553 = vmatpush1.bf16.msra.mxu0 %v1499_v3  ;;  %594 = vmatpush1.bf16.msra.mxu1 %v1500_v4  ;;  %v1506_v8 = vld [vmem:[#allocation5 + $0xc8] ss:$16 sps:$4 sm:$0xff]   ;;  %v1507_v9 = vld [vmem:[#allocation5 + $0xa4] ss:$16 sps:$4 sm:$0xff]   ;;  %v1509_v10 = vld [vmem:[#allocation5 + $0xac] ss:$16 sps:$4 sm:$0xff]  }
  0x6a   : > { %554 = vmatprep.subr.bf16.mxu0 %v1501_v5  ;;  %595 = vmatprep.subr.bf16.mxu1 %v1503_v6  ;;  %v1511_v11 = vld [vmem:[#allocation5 + $0xa0] ss:$16 sps:$4 sm:$0xff]   ;;  %v1512_v12 = vld [vmem:[#allocation5 + $0xa8] ss:$16 sps:$4 sm:$0xff]   ;;  %v1513_v13 = vld [vmem:[#allocation5 + $0x84] ss:$16 sps:$4 sm:$0xff]  }
  0x6b   : > { %v1515_v14 = vld [vmem:[#allocation5 + $0x8c] ss:$16 sps:$4 sm:$0xff]   ;;  %v1517_v15 = vld [vmem:[#allocation5 + $0x80] ss:$16 sps:$4 sm:$0xff]   ;;  %v1518_v16 = vld [vmem:[#allocation5 + $0x88] ss:$16 sps:$4 sm:$0xff]  }
  0x6c   : > { %v1519_v17 = vld [vmem:[#allocation5 + $0x64] ss:$16 sps:$4 sm:$0xff]   ;;  %v1521_v18 = vld [vmem:[#allocation5 + $0x6c] ss:$16 sps:$4 sm:$0xff]   ;;  %v1523_v19 = vld [vmem:[#allocation5 + $0x60] ss:$16 sps:$4 sm:$0xff]  }
  0x6d   : > { %555 = vmatpush1.bf16.msra.mxu0 %v1505_v7  ;;  %596 = vmatpush1.bf16.msra.mxu1 %v1506_v8  ;;  %v1524_v20 = vld [vmem:[#allocation5 + $0x68] ss:$16 sps:$4 sm:$0xff]   ;;  %v1525_v21 = vld [vmem:[#allocation5 + $0x44] ss:$16 sps:$4 sm:$0xff]   ;;  %v1527_v22 = vld [vmem:[#allocation5 + $0x4c] ss:$16 sps:$4 sm:$0xff]  }
  0x6e   : > { %556 = vmatprep.subr.bf16.mxu0 %v1507_v9  ;;  %597 = vmatprep.subr.bf16.mxu1 %v1509_v10  ;;  %v1529_v23 = vld [vmem:[#allocation5 + $0x40] ss:$16 sps:$4 sm:$0xff]   ;;  %v1530_v24 = vld [vmem:[#allocation5 + $0x48] ss:$16 sps:$4 sm:$0xff]   ;;  %v1531_v25 = vld [vmem:[#allocation5 + $0x24] ss:$16 sps:$4 sm:$0xff]  }
  0x6f   : > { %v1533_v26 = vld [vmem:[#allocation5 + $0x2c] ss:$16 sps:$4 sm:$0xff]   ;;  %v1535_v27 = vld [vmem:[#allocation5 + $0x20] ss:$16 sps:$4 sm:$0xff]   ;;  %v1536_v28 = vld [vmem:[#allocation5 + $0x28] ss:$16 sps:$4 sm:$0xff]  }
  0x70   : > { %v1537_v29 = vld [vmem:[#allocation5 + $0x4] ss:$16 sps:$4 sm:$0xff]   ;;  %v1539_v30 = vld [vmem:[#allocation5 + $0xc] ss:$16 sps:$4 sm:$0xff]   ;;  %v1541_v31 = vld [vmem:[#allocation5] ss:$16 sps:$4 sm:$0xff]  }
  0x71   : > { %557 = vmatpush1.bf16.msra.mxu0 %v1511_v11  ;;  %598 = vmatpush1.bf16.msra.mxu1 %v1512_v12  ;;  %v1542_v32 = vld [vmem:[#allocation5 + $0x8] ss:$16 sps:$4 sm:$0xff]   ;;  %v1543_v36 = vld [vmem:[#allocation8 + $0x70] ss:$8 sps:$4 sm:$0xff]   ;;  %v1549_v40 = vld [vmem:[#allocation8 + $0x60] ss:$8 sps:$4 sm:$0xff]  }
  0x72   : > { %558 = vmatprep.subr.bf16.mxu0 %v1513_v13  ;;  %599 = vmatprep.subr.bf16.mxu1 %v1515_v14  ;;  %v1545_v33 = vld [vmem:[#allocation8 + $0x74] ss:$8 sps:$4 sm:$0xff]   ;;  %v1546_v37 = vld [vmem:[#allocation8 + $0x170] ss:$8 sps:$4 sm:$0xff]   ;;  %v1551_v38 = vld [vmem:[#allocation8 + $0x64] ss:$8 sps:$4 sm:$0xff]  }
  0x73   : > { %v1548_v34 = vld [vmem:[#allocation8 + $0x174] ss:$8 sps:$4 sm:$0xff]   ;;  %v1554_v39 = vld [vmem:[#allocation8 + $0x164] ss:$8 sps:$4 sm:$0xff]   ;;  %v1552_v41 = vld [vmem:[#allocation8 + $0x160] ss:$8 sps:$4 sm:$0xff]  }
  0x74   : > { %v337_v35 = vld [vmem:[%s2009_s1] sm:$0xf]  ;;  %v1563_v46 = vld [vmem:[#allocation8 + $0x44] ss:$8 sps:$4 sm:$0xff]   ;;  %v1561_v48 = vld [vmem:[#allocation8 + $0x40] ss:$8 sps:$4 sm:$0xff]  }
  0x75   : > { %559 = vmatpush1.bf16.msra.mxu0 %v1517_v15  ;;  %600 = vmatpush1.bf16.msra.mxu1 %v1518_v16  ;;  %v1557_v42 = vld [vmem:[#allocation8 + $0x54] ss:$8 sps:$4 sm:$0xff]   ;;  %v1555_v44 = vld [vmem:[#allocation8 + $0x50] ss:$8 sps:$4 sm:$0xff]   ;;  %v1566_v47 = vld [vmem:[#allocation8 + $0x144] ss:$8 sps:$4 sm:$0xff]  }
  0x76   : > { %560 = vmatprep.subr.bf16.mxu0 %v1519_v17  ;;  %601 = vmatprep.subr.bf16.mxu1 %v1521_v18  ;;  %v1560_v43 = vld [vmem:[#allocation8 + $0x154] ss:$8 sps:$4 sm:$0xff]   ;;  %v1558_v45 = vld [vmem:[#allocation8 + $0x150] ss:$8 sps:$4 sm:$0xff]   ;;  %v1564_v49 = vld [vmem:[#allocation8 + $0x140] ss:$8 sps:$4 sm:$0xff]  }
  0x77   : > { %v1569_v50 = vld [vmem:[#allocation8 + $0x34] ss:$8 sps:$4 sm:$0xff]   ;;  %v1567_v52 = vld [vmem:[#allocation8 + $0x30] ss:$8 sps:$4 sm:$0xff]   ;;  %v1575_v54 = vld [vmem:[#allocation8 + $0x24] ss:$8 sps:$4 sm:$0xff]  }
  0x78   : > { %v1572_v51 = vld [vmem:[#allocation8 + $0x134] ss:$8 sps:$4 sm:$0xff]   ;;  %v1570_v53 = vld [vmem:[#allocation8 + $0x130] ss:$8 sps:$4 sm:$0xff]   ;;  %v1578_v55 = vld [vmem:[#allocation8 + $0x124] ss:$8 sps:$4 sm:$0xff]  }
  0x79   : > { %561 = vmatpush1.bf16.msra.mxu0 %v1523_v19  ;;  %602 = vmatpush1.bf16.msra.mxu1 %v1524_v20  ;;  %v1573_v56 = vld [vmem:[#allocation8 + $0x20] ss:$8 sps:$4 sm:$0xff]   ;;  %v1581_v58 = vld [vmem:[#allocation8 + $0x14] ss:$8 sps:$4 sm:$0xff]   ;;  %v1579_v60 = vld [vmem:[#allocation8 + $0x10] ss:$8 sps:$4 sm:$0xff]  }
  0x7a   : > { %562 = vmatprep.subr.bf16.mxu0 %v1525_v21  ;;  %603 = vmatprep.subr.bf16.mxu1 %v1527_v22  ;;  %v1576_v57 = vld [vmem:[#allocation8 + $0x120] ss:$8 sps:$4 sm:$0xff]   ;;  %v1584_v59 = vld [vmem:[#allocation8 + $0x114] ss:$8 sps:$4 sm:$0xff]   ;;  %v1582_v61 = vld [vmem:[#allocation8 + $0x110] ss:$8 sps:$4 sm:$0xff]  }
  0x7b   : > { %v1587_v62 = vld [vmem:[#allocation8 + $0x4] ss:$8 sps:$4 sm:$0xff]   ;;  %v1585_v0 = vld [vmem:[#allocation8] ss:$8 sps:$4 sm:$0xff]   ;;  %v1593_v2 = vld [vmem:[#allocation8 + $0xf4] ss:$8 sps:$4 sm:$0xff]  }
  0x7c   : > { %v1590_v63 = vld [vmem:[#allocation8 + $0x104] ss:$8 sps:$4 sm:$0xff]   ;;  %v1588_v1 = vld [vmem:[#allocation8 + $0x100] ss:$8 sps:$4 sm:$0xff]   ;;  %v1596_v3 = vld [vmem:[#allocation8 + $0x1f4] ss:$8 sps:$4 sm:$0xff]  }
  0x7d   : > { %563 = vmatpush1.bf16.msra.mxu0 %v1529_v23  ;;  %604 = vmatpush1.bf16.msra.mxu1 %v1530_v24  ;;  %v1591_v4 = vld [vmem:[#allocation8 + $0xf0] ss:$8 sps:$4 sm:$0xff]   ;;  %v1599_v6 = vld [vmem:[#allocation8 + $0xe4] ss:$8 sps:$4 sm:$0xff]   ;;  %v1597_v8 = vld [vmem:[#allocation8 + $0xe0] ss:$8 sps:$4 sm:$0xff]  }
  0x7e   : > { %564 = vmatprep.subr.bf16.mxu0 %v1531_v25  ;;  %605 = vmatprep.subr.bf16.mxu1 %v1533_v26  ;;  %v1594_v5 = vld [vmem:[#allocation8 + $0x1f0] ss:$8 sps:$4 sm:$0xff]   ;;  %v1602_v7 = vld [vmem:[#allocation8 + $0x1e4] ss:$8 sps:$4 sm:$0xff]   ;;  %v1600_v9 = vld [vmem:[#allocation8 + $0x1e0] ss:$8 sps:$4 sm:$0xff]  }
  0x7f   : > { %v1605_v10 = vld [vmem:[#allocation8 + $0xd4] ss:$8 sps:$4 sm:$0xff]   ;;  %v1603_v12 = vld [vmem:[#allocation8 + $0xd0] ss:$8 sps:$4 sm:$0xff]   ;;  %v1611_v14 = vld [vmem:[#allocation8 + $0xc4] ss:$8 sps:$4 sm:$0xff]  }
  0x80   : > { %v1608_v11 = vld [vmem:[#allocation8 + $0x1d4] ss:$8 sps:$4 sm:$0xff]   ;;  %v1606_v13 = vld [vmem:[#allocation8 + $0x1d0] ss:$8 sps:$4 sm:$0xff]   ;;  %v1614_v15 = vld [vmem:[#allocation8 + $0x1c4] ss:$8 sps:$4 sm:$0xff]  }
  0x81   : > { %565 = vmatpush1.bf16.msra.mxu0 %v1535_v27  ;;  %606 = vmatpush1.bf16.msra.mxu1 %v1536_v28  ;;  %v1609_v16 = vld [vmem:[#allocation8 + $0xc0] ss:$8 sps:$4 sm:$0xff]   ;;  %v1617_v18 = vld [vmem:[#allocation8 + $0xb4] ss:$8 sps:$4 sm:$0xff]   ;;  %v1615_v20 = vld [vmem:[#allocation8 + $0xb0] ss:$8 sps:$4 sm:$0xff]  }
  0x82   : > { %566 = vmatprep.subr.bf16.mxu0 %v1537_v29  ;;  %607 = vmatprep.subr.bf16.mxu1 %v1539_v30  ;;  %v1612_v17 = vld [vmem:[#allocation8 + $0x1c0] ss:$8 sps:$4 sm:$0xff]   ;;  %v1620_v19 = vld [vmem:[#allocation8 + $0x1b4] ss:$8 sps:$4 sm:$0xff]   ;;  %v1618_v21 = vld [vmem:[#allocation8 + $0x1b0] ss:$8 sps:$4 sm:$0xff]  }
  0x83   : > { %v1623_v22 = vld [vmem:[#allocation8 + $0xa4] ss:$8 sps:$4 sm:$0xff]   ;;  %v1621_v24 = vld [vmem:[#allocation8 + $0xa0] ss:$8 sps:$4 sm:$0xff]   ;;  %v1629_v26 = vld [vmem:[#allocation8 + $0x94] ss:$8 sps:$4 sm:$0xff]  }
  0x84   : > { %v1626_v23 = vld [vmem:[#allocation8 + $0x1a4] ss:$8 sps:$4 sm:$0xff]   ;;  %v1624_v25 = vld [vmem:[#allocation8 + $0x1a0] ss:$8 sps:$4 sm:$0xff]   ;;  %v1632_v27 = vld [vmem:[#allocation8 + $0x194] ss:$8 sps:$4 sm:$0xff]  }
  0x85   : > { %567 = vmatpush1.bf16.msra.mxu0 %v1541_v31  ;;  %608 = vmatpush1.bf16.msra.mxu1 %v1542_v32  ;;  %v1627_v28 = vld [vmem:[#allocation8 + $0x90] ss:$8 sps:$4 sm:$0xff]   ;;  %v1633_v30 = vld [vmem:[#allocation8 + $0x80] ss:$8 sps:$4 sm:$0xff]   ;;  %v1635_v31 = vld [vmem:[#allocation8 + $0x84] ss:$8 sps:$4 sm:$0xff]  }
  0x86   : > { %1054 = vmatprep.subr.bf16.mxu0 %v1545_v33  ;;  %1095 = vmatprep.subr.bf16.mxu1 %v1548_v34  ;;  %v1630_v29 = vld [vmem:[#allocation8 + $0x190] ss:$8 sps:$4 sm:$0xff]   ;;  %v1636_v32 = vld [vmem:[#allocation8 + $0x180] ss:$8 sps:$4 sm:$0xff]   ;;  %v1638_v33 = vld [vmem:[#allocation8 + $0x184] ss:$8 sps:$4 sm:$0xff]   ;;  %v372_v34 = vlaneseq }
  0x87   : > { %s1412_s23 = sshll.u32 %s1900_s28, 8  ;;  %s335_s29 = scalar_lea.vmem [#allocation10], %s1310_s9 }
  0x88   : > { %585 = vmatmul.mubr.bf16.vlgmr.msra.gmra.mxu0 %v337_v35  ;;  %626 = vmatmul.mubr.bf16.vlgmr.msra.gmra.mxu1 %v337_v35  ;;  %v373_v35 = vshrl.u32 %v372_v34, 7  ;;  %s1198_s16 = sshll.u32 %s335_s29, 4  ;;  %s2050_s19 = scalar_lea.hbm %s2094_s7, %s1412_s23  ;;  %s1199_s16 = int_to_ptr.vmem [resolvable:$true] %s1198_s16 }
  0x89   : > { %1055 = vmatpush1.bf16.msra.mxu0 %v1543_v36  ;;  %1096 = vmatpush1.bf16.msra.mxu1 %v1546_v37  ;;  %s1184_s22 = scalar_lea.sflag [#allocation4], %s2005_s18  ;;  %s1755_s1 = scalar_lea.vmem %s1199_s16, 256 }
  0x8a   : > { %1056 = vmatprep.subr.bf16.mxu0 %v1551_v38  ;;  %1097 = vmatprep.subr.bf16.mxu1 %v1554_v39  ;;  %v2024_v36 = vsub.s32 0, %v373_v35  ;;  %v382_v37 = vsub.s32 2, %v373_v35  ;;  %v370_v38 = vld [vmem:[#allocation7] sm:$0xf]  ;;  %v2026_v39 = vsub.s32 1, %v373_v35  ;;  %p1756_p4 = scmp.ne.s32.totalorder %s1199_s16, %s1755_s1  ;;  %p2116_p6 = scmp.ne.s32.totalorder %s2108_s21, 0 }
  0x8b   : > { %s1838_s28 = smov [#allocation10]  }
  0x8c   : > { %p1757_p12 = pnand %p1756_p4, %p2116_p6  ;;  %s1759_s2 = sshll.u32 %s1838_s28, 4  ;;  %s1760_s2 = int_to_ptr.vmem [resolvable:$false] %s1759_s2 }
  0x8d   : > { %1057 = vmatpush1.bf16.msra.mxu0 %v1549_v40  ;;  %1098 = vmatpush1.bf16.msra.mxu1 %v1552_v41  ;;  %v386_v40 = vsub.s32 3, %v373_v35  ;;  %v375_v41 = vrot.slane %v370_v38, %v2024_v36  ;;  %s1761_s30 = scalar_lea.vmem %s1760_s2, 512  ;;  %p1762_p5 = scmp.lt.s32.totalorder %s1199_s16, %s1760_s2 }
  0x8e   : > { %1058 = vmatprep.subr.bf16.mxu0 %v1557_v42  ;;  %1099 = vmatprep.subr.bf16.mxu1 %v1560_v43  ;;  %v383_v42 = vrot.slane %v370_v38, %v382_v37  ;;  %p1758_p0 = pneg %p1757_p12  ;;  %p1763_p3 = scmp.lt.s32.totalorder %s1761_s30, %s1755_s1 }
  0x90   : > { %p1764_p7 = por %p1763_p3, %p1762_p5 }
  0x91   : > { %1059 = vmatpush1.bf16.msra.mxu0 %v1555_v44  ;;  %1100 = vmatpush1.bf16.msra.mxu1 %v1558_v45  ;;  %v379_v45 = vrot.slane %v370_v38, %v2026_v39 }
  0x92   : > { %1060 = vmatprep.subr.bf16.mxu0 %v1563_v46  ;;  %1101 = vmatprep.subr.bf16.mxu1 %v1566_v47  ;;  %v387_v46 = vrot.slane %v370_v38, %v386_v40  ;;  %p1765_p9 = pnand %p1764_p7, %p1758_p0 }
  0x95   : > { %1061 = vmatpush1.bf16.msra.mxu0 %v1561_v48  ;;  %1102 = vmatpush1.bf16.msra.mxu1 %v1564_v49 }
  0x96   : > { %1062 = vmatprep.subr.bf16.mxu0 %v1569_v50  ;;  %1103 = vmatprep.subr.bf16.mxu1 %v1572_v51 }
  0x99   : > { %1063 = vmatpush1.bf16.msra.mxu0 %v1567_v52  ;;  %1104 = vmatpush1.bf16.msra.mxu1 %v1570_v53 }
  0x9a   : > { %1064 = vmatprep.subr.bf16.mxu0 %v1575_v54  ;;  %1105 = vmatprep.subr.bf16.mxu1 %v1578_v55 }
  0x9d   : > { %1065 = vmatpush1.bf16.msra.mxu0 %v1573_v56  ;;  %1106 = vmatpush1.bf16.msra.mxu1 %v1576_v57 }
  0x9e   : > { %1066 = vmatprep.subr.bf16.mxu0 %v1581_v58  ;;  %1107 = vmatprep.subr.bf16.mxu1 %v1584_v59 }
  0xa1   : > { %1067 = vmatpush1.bf16.msra.mxu0 %v1579_v60  ;;  %1108 = vmatpush1.bf16.msra.mxu1 %v1582_v61 }
  0xa2   : > { %1068 = vmatprep.subr.bf16.mxu0 %v1587_v62  ;;  %1109 = vmatprep.subr.bf16.mxu1 %v1590_v63 }
  0xa5   : > { %1069 = vmatpush1.bf16.msra.mxu0 %v1585_v0  ;;  %1110 = vmatpush1.bf16.msra.mxu1 %v1588_v1 }
  0xa6   : > { %1070 = vmatprep.subr.bf16.mxu0 %v1593_v2  ;;  %1111 = vmatprep.subr.bf16.mxu1 %v1596_v3 }
  0xa9   : > { %1071 = vmatpush2.bf16.msra.mxu0 %v1591_v4  ;;  %1112 = vmatpush2.bf16.msra.mxu1 %v1594_v5 }
  0xaa   : > { %1072 = vmatprep.subr.bf16.mxu0 %v1599_v6  ;;  %1113 = vmatprep.subr.bf16.mxu1 %v1602_v7 }
  0xad   : > { %1073 = vmatpush2.bf16.msra.mxu0 %v1597_v8  ;;  %1114 = vmatpush2.bf16.msra.mxu1 %v1600_v9 }
  0xae   : > { %1074 = vmatprep.subr.bf16.mxu0 %v1605_v10  ;;  %1115 = vmatprep.subr.bf16.mxu1 %v1608_v11 }
  0xb1   : > { %1075 = vmatpush2.bf16.msra.mxu0 %v1603_v12  ;;  %1116 = vmatpush2.bf16.msra.mxu1 %v1606_v13 }
  0xb2   : > { %1076 = vmatprep.subr.bf16.mxu0 %v1611_v14  ;;  %1117 = vmatprep.subr.bf16.mxu1 %v1614_v15 }
  0xb5   : > { %1077 = vmatpush2.bf16.msra.mxu0 %v1609_v16  ;;  %1118 = vmatpush2.bf16.msra.mxu1 %v1612_v17  ;;  %v722_v17 = vld [vmem:[%s2091_s4] sm:$0x3] }
  0xb6   : > { %1078 = vmatprep.subr.bf16.mxu0 %v1617_v18  ;;  %1119 = vmatprep.subr.bf16.mxu1 %v1620_v19  ;;  %v727_v18 = vrot.slane %v722_v17, %v2024_v36  ;;  %v731_v19 = vrot.slane %v722_v17, %v2026_v39 }
  0xb9   : > { %1079 = vmatpush2.bf16.msra.mxu0 %v1615_v20  ;;  %1120 = vmatpush2.bf16.msra.mxu1 %v1618_v21 }
  0xba   : > { %1080 = vmatprep.subr.bf16.mxu0 %v1623_v22  ;;  %1121 = vmatprep.subr.bf16.mxu1 %v1626_v23 }
  0xbd   : > { %1081 = vmatpush2.bf16.msra.mxu0 %v1621_v24  ;;  %1122 = vmatpush2.bf16.msra.mxu1 %v1624_v25 }
  0xbe   : > { %1082 = vmatprep.subr.bf16.mxu0 %v1629_v26  ;;  %1123 = vmatprep.subr.bf16.mxu1 %v1632_v27 }
  0xc1   : > { %1083 = vmatpush2.bf16.msra.mxu0 %v1627_v28  ;;  %1124 = vmatpush2.bf16.msra.mxu1 %v1630_v29 }
  0xc2   : > { %1084 = vmatprep.subr.bf16.mxu0 %v1635_v31  ;;  %1125 = vmatprep.subr.bf16.mxu1 %v1638_v33 }
  0xc5   : > { %1085 = vmatpush2.bf16.msra.mxu0 %v1633_v30  ;;  %1126 = vmatpush2.bf16.msra.mxu1 %v1636_v32 }
 0x148   : > { %v586_v43 = vpop.f32.mrf.mxu0  ;;  %v627_v44 = vpop.f32.mrf.mxu1 }
 0x149   : > { %v587_v47 = vadd.f32 %v586_v43, %v375_v41  ;;  %v628_v48 = vadd.f32 %v627_v44, %v383_v42 }
 0x14a   : > { %v588_v49 = vpop.f32.mrf.mxu0  ;;  %v629_v50 = vpop.f32.mrf.mxu1 }
 0x14b   : > { %v638_v51 = vmul.f32 0.70710677, %v587_v47  ;;  %v640_v52 = vmul.f32 0.70710677, %v628_v48  ;;  %v589_v53 = vadd.f32 %v588_v49, %v379_v45  ;;  %v630_v54 = vadd.f32 %v629_v50, %v387_v46  ;;  %v1153_v45 = vld [vmem:[%s2092_s5] sm:$0x3] }
 0x14c   : > { %v590_v55 = vpop.f32.mrf.mxu0  ;;  %v631_v56 = vpop.f32.mrf.mxu1  ;;  %v634_v2 = vmul.f32 0.5, %v587_v47  ;;  %v636_v4 = vmul.f32 0.5, %v628_v48  ;;  %v1167_v46 = vld [vmem:[%s2093_s6] sm:$0x3]  ;;  %v1158_v47 = vrot.slane %v1153_v45, %v2024_v36  ;;  %v1162_v48 = vrot.slane %v1153_v45, %v2026_v39 }
 0x14d   : > { %1639 = verf.f32 %v638_v51  ;;  %v639_v57 = vmul.f32 0.70710677, %v589_v53  ;;  %v641_v60 = vmul.f32 0.70710677, %v630_v54  ;;  %v635_v5 = vmul.f32 0.5, %v589_v53 }
 0x14e   : > { %1641 = verf.f32 %v640_v52  ;;  %v591_v58 = vpop.f32.mrf.mxu0  ;;  %v632_v59 = vpop.f32.mrf.mxu1  ;;  %v637_v8 = vmul.f32 0.5, %v630_v54  ;;  %v1172_v52 = vrot.slane %v1167_v46, %v2024_v36  ;;  %v1176_v53 = vrot.slane %v1167_v46, %v2026_v39 }
 0x14f   : > { %1643 = verf.f32 %v639_v57 }
 0x150   : > { %1645 = verf.f32 %v641_v60 }
 0x15a   : > { %v1640_v61 = vpop.eup %1639 }
 0x15b   : > { %v1642_v62 = vpop.eup %1641  ;;  %v646_v63 = vadd.f32 1.0, %v1640_v61 }
 0x15c   : > { %v648_v0 = vadd.f32 1.0, %v1642_v62  ;;  %v1644_v1 = vpop.eup %1643 }
 0x15d   : > { %v1646_v3 = vpop.eup %1645  ;;  %v647_v6 = vadd.f32 1.0, %v1644_v1  ;;  %v650_v7 = vmul.f32 %v646_v63, %v634_v2 }
 0x15e   : > { %v649_v9 = vadd.f32 1.0, %v1646_v3  ;;  %v652_v10 = vmul.f32 %v648_v0, %v636_v4 }
 0x15f   : > { %v651_v11 = vmul.f32 %v647_v6, %v635_v5  ;;  %v654_v14 = vpack.c.bf16 %v650_v7, %v650_v7 }
 0x160   : > { %v653_v12 = vmul.f32 %v649_v9, %v637_v8  ;;  %v656_v16 = vpack.c.bf16 %v652_v10, %v652_v10 }
 0x161   : > { %v655_v13 = vpack.c.bf16 %v651_v11, %v651_v11 }
 0x162   : > { %v657_v15 = vpack.c.bf16 %v653_v12, %v653_v12 }
 0x163   : > { %1086 = vmatprep.mubr.bf16.mxu0 %v655_v13 }
 0x164   : > { %1127 = vmatprep.mubr.bf16.mxu1 %v657_v15  ;;  %1087 = vmatmul.mubr.bf16.vlgmr.msra.gmra.mxu0 %v654_v14 }
 0x165   : > { %1128 = vmatmul.mubr.bf16.vlgmr.msra.gmra.mxu1 %v656_v16 }
 0x224   : > { %v1088_v20 = vpop.f32.mrf.mxu0 }
 0x225   : > { %v1089_v21 = vadd.f32 %v1088_v20, %v727_v18  ;;  %v1129_v22 = vpop.f32.mrf.mxu1 }
 0x226   : > { %v1090_v23 = vpop.f32.mrf.mxu0 }
 0x227   : > { %v1091_v24 = vadd.f32 %v1090_v23, %v731_v19  ;;  %v1131_v25 = vpop.f32.mrf.mxu1  ;;  %v1130_v27 = vadd.f32 %v1129_v22, %v1089_v21 }
 0x228   : > { %v1092_v26 = vpop.f32.mrf.mxu0 }
 0x229   : > { %v1132_v28 = vadd.f32 %v1131_v25, %v1091_v24  ;;  %v1133_v29 = vpop.f32.mrf.mxu1 }
 0x22a   : > { %v1093_v30 = vpop.f32.mrf.mxu0 }
 0x22b   : > { %v1134_v31 = vpop.f32.mrf.mxu1  ;;  %v1136_v32 = vadd.f32 %v1132_v28, %v1130_v27 }
 0x22d   : > { %1137 = vadd.xlane.f32.xlu0 %v1136_v32 }
 0x2b6   : > { %v1138_v33 = vpop.xlane.xlu0 %1137 }
 0x2b7   : > { %v1140_v34 = vmul.f32 0.00390625, %v1138_v33 }
 0x2b9   : > { %v1141_v35 = vsub.f32 %v1130_v27, %v1140_v34  ;;  %v1142_v37 = vsub.f32 %v1132_v28, %v1140_v34 }
 0x2bb   : > { %v1143_v38 = vmul.f32 %v1141_v35, %v1141_v35  ;;  %v1144_v40 = vmul.f32 %v1142_v37, %v1142_v37 }
 0x2bd   : > { %v1145_v41 = vadd.f32 %v1144_v40, %v1143_v38 }
 0x2bf   : > { %1146 = vadd.xlane.f32.xlu0 %v1145_v41 }
 0x348   : > { %v1147_v42 = vpop.xlane.xlu0 %1146 }
 0x349   : > { %v1148_v43 = vmul.f32 0.00390625, %v1147_v42 }
 0x34b   : > { %v1149_v44 = vadd.f32 1e-05, %v1148_v43 }
 0x34d   : > { %1647 = vrsqrt.f32 %v1149_v44 }
 0x35a   : > { %v1648_v49 = vpop.eup %1647 }
 0x35b   : > { %v1151_v50 = vmul.f32 %v1648_v49, %v1141_v35  ;;  %v1152_v51 = vmul.f32 %v1648_v49, %v1142_v37 }
 0x35d   : > { %v1165_v54 = vmul.f32 %v1158_v47, %v1151_v50  ;;  %v1166_v55 = vmul.f32 %v1162_v48, %v1152_v51 }
 0x35f   : > { %v1179_v56 = vadd.f32 %v1172_v52, %v1165_v54  ;;  %v1180_v57 = vadd.f32 %v1176_v53, %v1166_v55 }
 0x361   : > { %1181 = vst [vmem:[%s335_s29] sm:$0xff] %v1179_v56  ;;  %1182 = vst [vmem:[%s335_s29 + $0x8] sm:$0xff] %v1180_v57 }
 0x362   : > { %1768 = shalt.err (!%p1765_p9)
}
 0x363   : > { %s1769_s9 = scalar_lea.hbm %s2050_s19, 256  ;;  %s1773_s13 = scalar_lea.hbm %s2094_s7, 512 }
 0x364   : > { %p1770_p13 = scmp.ne.s32.totalorder %s2050_s19, %s1769_s9  ;;  %p1774_p10 = scmp.lt.s32.totalorder %s2050_s19, %s2094_s7 }
 0x365   : > { %p1775_p11 = scmp.lt.s32.totalorder %s1773_s13, %s1769_s9 }
 0x366   : > { %p1771_p1 = pnand %p1770_p13, %p2116_p6 }
 0x367   : > { %p1776_p2 = por %p1775_p11, %p1774_p10 }
 0x368   : > { %p1772_p8 = pneg %p1771_p1 }
 0x36a   : > { %p1777_p4 = pnand %p1776_p2, %p1772_p8 }
 0x36c   : > { %1780 = shalt.err (!%p1777_p4)
}
 0x36d   : > { %1427 = dma.vmem_to_hbm [thread:$0]  (%p2116_p6), %s1199_s16, 256, %s2050_s19, %s1184_s22  }
 0x36e PF: > { %s1210_s23 = sand.u32 1, %s1815_s24   ;;  %p2117_p12 = scmp.ne.s32.totalorder %s2102_s8, 0 }
 0x36f   : > { %p2118_p0 = scmp.ge.s32.totalorder %s1827_s27, 2  ;;  %s1211_s29 = scalar_lea.sflag [#allocation4], %s1210_s23 }
 0x371   : > { %p1444_p5 = pnand %p2118_p0, %p2117_p12 }
 0x373   : > { %p1445_p3 = pneg %p1444_p5 }
 0x375   : > { %1810 = dma.done.wait (%p1445_p3), %s1211_s29, 256  }
 0x376   : > { %1812 = vsyncadd (%p1445_p3), %s1211_s29, 4294967040  ;;  %p22_p7 = scmp.ge.s32.totalorder %s1959_s17, 4   ;;  %s2119_s24 = smov %s1819_s25 }
 0x377   : > { %s2120_s25 = smov %s1823_s26  ;;  %s2121_s26 = smov %s1969_s20 }
 0x378   : > { %s2122_s27 = smov %s1959_s17  ;;  %24 = sbr.rel (!%p22_p7) target bundleno = 10 (0xa), region = 105 }
 0x37d   :  { %1216 = vsyncpa [#allocation3], 1 }
 0x37e   :  { %1218 = vsyncpa [#allocation3 + $0x1], 1 }
 0x37f   :  { %1219 = vsyncpa [#allocation6], 1 }
 0x380   :  { %1220 = vsyncpa [#allocation9], 1 }
 0x381   :  { %1221 = vsyncpa [#allocation4], 1 }
 0x382   :  { %1223 = vsyncpa [#allocation4 + $0x1], 1 }

// kernel: tpu_custom_call.1
= control target key start
LH: loop header
LB: loop body
LE: loop exit
PB: predicated region body
PF: predicated region fallthrough
CT: control target
= control target key end

     0   :  { %s2087_s0 = inlined_call_operand.hbm [shape: bf16[16,128], index: 0, kind: input, shape index: {}]   ;;  %s2088_s1 = inlined_call_operand.hbm [shape: bf16[128,512], index: 1, kind: input, shape index: {}]   ;;  %s2089_s2 = inlined_call_operand.hbm [shape: f32[1,512], index: 2, kind: input, shape index: {}]   ;;  %s2090_s3 = inlined_call_operand.hbm [shape: bf16[512,256], index: 3, kind: input, shape index: {}]   ;;  %s2091_s4 = inlined_call_operand.vmem [shape: f32[1,256], index: 4, kind: input, shape index: {}]   ;;  %s2092_s5 = inlined_call_operand.vmem [shape: f32[1,256], index: 5, kind: input, shape index: {}]   ;;  %s2093_s6 = inlined_call_operand.vmem [shape: f32[1,256], index: 6, kind: input, shape index: {}]   ;;  %s2094_s7 = inlined_call_operand.hbm [shape: f32[16,256], index: 7, kind: output, shape index: {}]  }
   0x1   :  { %2099 = sst [smem:[#allocation15_spill]] %s2088_s1 }
   0x2   :  { %2100 = sst [smem:[#allocation16_spill]] %s2089_s2 }
   0x3   :  { %12 = vsyncpa [#allocation3], 0 }
   0x4   :  { %14 = vsyncpa [#allocation3 + $0x1], 0 }
   0x5   :  { %15 = vsyncpa [#allocation6], 0 }
   0x6   :  { %16 = vsyncpa [#allocation9], 0 }
   0x7   :  { %17 = vsyncpa [#allocation4], 0 }
   0x8   :  { %19 = vsyncpa [#allocation4 + $0x1], 0  ;;  %s1879_s24 = smov 0   ;;  %s1881_s25 = smov 0  }
   0x9   :  { %s1883_s26 = smov 0   ;;  %s1885_s27 = smov 0  }
   0xa LB: > { %s1900_s28 = sadd.s32 4294967295, %s1827_s27   ;;  %s1297_s29 = sadd.s32 4294967294, %s1827_s27   ;;  %s1827_s27 = sphi %s1885_s27, %s2122_s27   ;;  %s1823_s26 = sphi %s1883_s26, %s2121_s26   ;;  %s1819_s25 = sphi %s1881_s25, %s2120_s25   ;;  %s1815_s24 = sphi %s1879_s24, %s2119_s24  }
   0xb   : > { %p45_p0 = scmp.ne.s32.totalorder %s1819_s25, %s1815_s24  ;;  %p2095_p1 = scmp.eq.s32.totalorder %s1900_s28, 0 }
   0xc   : > { %p201_p3 = scmp.eq.s32.totalorder %s1297_s29, 1  ;;  %p1298_p5 = scmp.ge.s32.totalorder %s1827_s27, 1 }
   0xd   : > { %p1909_p4 = por %p2095_p1, %p45_p0  ;;  %p208_p7 = scmp.lt.s32.totalorder %s1827_s27, 3 }
   0xe   : > { %p1914_p6 = por %p201_p3, %p45_p0  ;;  %s1829_s10 = smov [#allocation5]  }
   0xf   : > { %s2101_s30 = scalar_select %p1909_p4, 1, 0 }
  0x10   : > { %s2102_s8 = scalar_select %p1914_p6, 1, 0 }
  0x11   : > { %p1919_p8 = pnand %p1298_p5, %p208_p7  ;;  %s220_s11 = sshll.u32 %s1829_s10, 4  ;;  %s221_s11 = int_to_ptr.vmem [resolvable:$true] %s220_s11 }
  0x12   : > { %s1830_s13 = smov [#allocation7]   ;;  %s1831_s15 = smov [#allocation8]  }
  0x13   : > { %s2103_s9 = scalar_select %p1919_p8, 1, 0 }
  0x14   : > { %p1429_p9 = pneg %p1919_p8  ;;  %s234_s14 = sshll.u32 %s1830_s13, 4  ;;  %s235_s14 = int_to_ptr.vmem [resolvable:$true] %s234_s14 }
  0x15   : > { %s244_s16 = sshll.u32 %s1831_s15, 4  ;;  %s1660_s17 = scalar_lea.vmem %s221_s11, 4096  ;;  %s245_s16 = int_to_ptr.vmem [resolvable:$true] %s244_s16 }
  0x16   : > { %p1928_p11 = pnand %p1429_p9, %p2095_p1  ;;  %p1661_p13 = scmp.ne.s32.totalorder %s221_s11, %s1660_s17 }
  0x17   : > { %p1668_p5 = scmp.lt.s32.totalorder %s221_s11, %s221_s11  ;;  %p1669_p7 = scmp.lt.s32.totalorder %s1660_s17, %s1660_s17 }
  0x18   : > { %p1651_p12 = pneg %p1928_p11 }
  0x19   : > { %p1670_p9 = por %p1669_p7, %p1668_p5 }
  0x1a   : > { %p1663_p0 = pnand %p1661_p13, %p1651_p12 }
  0x1c   : > { %p1664_p3 = pneg %p1663_p0 }
  0x1e   : > { %p1671_p10 = pnand %p1670_p9, %p1664_p3 }
  0x20   : > { %1674 = shalt.err (!%p1671_p10)
}
  0x21   : > { %s1832_s18 = smov 256   ;;  %s1833_s19 = smov 16  }
  0x22   : > { %s2105_s1 = sld [smem:[#allocation15_spill]]  ;;  %s1686_s22 = scalar_lea.vmem %s235_s14, 64 }
  0x23   : > { %p1687_p1 = scmp.ne.s32.totalorder %s235_s14, %s1686_s22  ;;  %p1694_p2 = scmp.lt.s32.totalorder %s235_s14, %s235_s14 }
  0x24   : > { %p1695_p6 = scmp.lt.s32.totalorder %s1686_s22, %s1686_s22 }
  0x25   : > { %p1689_p13 = pnand %p1687_p1, %p1651_p12 }
  0x26   : > { %p1696_p5 = por %p1695_p6, %p1694_p2 }
  0x27   : > { %p1690_p0 = pneg %p1689_p13 }
  0x28   : > { %1432 = dma.hbm_to_vmem [thread:$0]  (!%p1928_p11), %s2105_s1, 4096, %s221_s11, [#allocation6], %s1832_s18, %s1832_s18, %s1833_s19  }
  0x29   : > { %p1697_p3 = pnand %p1696_p5, %p1690_p0 }
  0x2b   : > { %1700 = shalt.err (!%p1697_p3)
}
  0x2c   : > { %s2106_s2 = sld [smem:[#allocation16_spill]]  ;;  %s1712_s10 = scalar_lea.vmem %s245_s16, 8192 }
  0x2d   : > { %p1713_p10 = scmp.ne.s32.totalorder %s245_s16, %s1712_s10  ;;  %p1720_p9 = scmp.lt.s32.totalorder %s245_s16, %s245_s16 }
  0x2e   : > { %p1721_p13 = scmp.lt.s32.totalorder %s1712_s10, %s1712_s10 }
  0x2f   : > { %p1715_p7 = pnand %p1713_p10, %p1651_p12 }
  0x30   : > { %p1722_p4 = por %p1721_p13, %p1720_p9 }
  0x31   : > { %p1716_p1 = pneg %p1715_p7 }
  0x32   : > { %1435 = dma.hbm_to_vmem [thread:$0]  (!%p1928_p11), %s2106_s2, 64, %s235_s14, [#allocation6]  }
  0x33   : > { %p1723_p2 = pnand %p1722_p4, %p1716_p1 }
  0x35   : > { %1726 = shalt.err (!%p1723_p2)
}
  0x36   : > { %s1834_s11 = smov 128   ;;  %s1835_s13 = smov 8  }
  0x37   : > { %1438 = dma.hbm_to_vmem [thread:$0]  (!%p1928_p11), %s2090_s3, 8192, %s245_s16, [#allocation9], %s1834_s11, %s1834_s11, %s1835_s13  }
  0x38   : > { %s1959_s17 = sadd.s32 1, %s1827_s27   ;;  %s32_s19 = sadd.s32 1, %s1823_s26 }
  0x39   : > { %s29_s18 = ssub.s32 %s1827_s27, %s1959_s17  ;;  %p39_p6 = scmp.ne.s32.totalorder %s1823_s26, %s1819_s25 }
  0x3a   : > { %p30_p4 = scmp.eq.s32.totalorder %s29_s18, 0  ;;  %p40_p12 = scmp.eq.s32.totalorder %s1827_s27, 0 }
  0x3b   : > { %p1450_p0 = scmp.lt.s32.totalorder %s1827_s27, 2  ;;  %p2107_p3 = scmp.eq.s32.totalorder %s1900_s28, 1 }
  0x3c   : > { %s1969_s20 = scalar_select %p30_p4, %s1823_s26, %s32_s19  }
  0x3d   : > { %p41_p5 = por %p40_p12, %p39_p6  ;;  %p1973_p10 = por %p2107_p3, %p39_p6 }
  0x3e   : > { %s267_s12 = sand.u32 1, %s1823_s26   ;;  %s1304_s22 = sshll.u32 %s1827_s27, 6 }
  0x3f   : > { %s2108_s21 = scalar_select %p1973_p10, 1, 0 }
  0x40   : > { %s1303_s16 = sshll.u32 %s267_s12, 2  ;;  %s1982_s10 = scalar_lea.hbm %s2087_s0, %s1304_s22 }
  0x41   : > { %s271_s11 = scalar_lea.vmem [#allocation2], %s1303_s16  ;;  %p1984_p11 = pnand %p1450_p0, %p41_p5 }
  0x42   : > { %s278_s13 = sshll.u32 %s271_s11, 4  ;;  %s268_s15 = scalar_lea.sflag [#allocation3], %s267_s12  ;;  %s279_s13 = int_to_ptr.vmem [resolvable:$true] %s278_s13 }
  0x43   : > { %s1727_s18 = scalar_lea.hbm %s1982_s10, 64  ;;  %p1729_p1 = pneg %p1984_p11 }
  0x44   : > { %p1728_p7 = scmp.ne.s32.totalorder %s1982_s10, %s1727_s18  ;;  %s1732_s23 = scalar_lea.hbm %s2087_s0, 128 }
  0x45   : > { %p1733_p2 = scmp.lt.s32.totalorder %s1982_s10, %s2087_s0  ;;  %p1734_p4 = scmp.lt.s32.totalorder %s1732_s23, %s1727_s18 }
  0x46   : > { %p1730_p9 = pnand %p1729_p1, %p1728_p7 }
  0x47   : > { %p1735_p6 = por %p1734_p4, %p1733_p2 }
  0x48   : > { %p1731_p13 = pneg %p1730_p9 }
  0x4a   : > { %p1736_p12 = pnand %p1735_p6, %p1731_p13 }
  0x4c   : > { %1739 = shalt.err (!%p1736_p12)
}
  0x4d   : > { %s1740_s11 = scalar_lea.vmem %s279_s13, 64  ;;  %s1836_s12 = smov [#allocation2]  }
  0x4e   : > { %p1741_p0 = scmp.ne.s32.totalorder %s279_s13, %s1740_s11  ;;  %s1745_s1 = sshll.u32 %s1836_s12, 4  ;;  %s1746_s1 = int_to_ptr.vmem [resolvable:$false] %s1745_s1 }
  0x4f   : > { %s1747_s2 = scalar_lea.vmem %s1746_s1, 128  ;;  %p1748_p7 = scmp.lt.s32.totalorder %s279_s13, %s1746_s1 }
  0x50   : > { %p1743_p5 = pnand %p1741_p0, %p1729_p1  ;;  %p1749_p9 = scmp.lt.s32.totalorder %s1747_s2, %s1740_s11 }
  0x52   : > { %p1744_p3 = pneg %p1743_p5  ;;  %p1750_p10 = por %p1749_p9, %p1748_p7 }
  0x54   : > { %p1751_p8 = pnand %p1750_p10, %p1744_p3 }
  0x56   : > { %1754 = shalt.err (!%p1751_p8)
}
  0x57   : > { %1442 = dma.hbm_to_vmem [thread:$0]  (!%p1984_p11), %s1982_s10, 64, %s279_s13, %s268_s15  }
  0x58   : > { %p2110_p13 = scmp.ne.s32.totalorder %s2103_s9, 0 }
  0x59   : > { %s2005_s18 = sand.u32 (!%p2110_p13), 1, %s1819_s25   ;;  %p2111_p1 = scmp.ne.s32.totalorder (!%p2110_p13), %s2101_s30, 0 }
  0x5a   : > { %287 = sbr.rel (%p2110_p13) target bundleno = 878 (0x36e), region = 48  ;;  %s1306_s19 = sshll.u32 (!%p2110_p13), %s2005_s18, 2 }
  0x5b   : > { %s290_s22 = scalar_lea.sflag (!%p2110_p13), [#allocation3], %s2005_s18  ;;  %s2009_s1 = scalar_lea.vmem (!%p2110_p13), [#allocation2], %s1306_s19 }
  0x5f   : > { %1798 = dma.done.wait (%p2111_p1), %s290_s22, 64  }
  0x60   : > { %1800 = vsyncadd (%p2111_p1), %s290_s22, 4294967232  ;;  %p2112_p8 = scmp.eq.s32.totalorder %s1900_s28, 0 }
  0x62   : > { %1802 = dma.done.wait (%p2112_p8), [#allocation6], 4160   ;;  %p2113_p10 = pmov %p2112_p8 }
  0x63   : > { %p2114_p11 = pmov %p2112_p8 }
  0x64   : > { %1804 = vsyncadd (%p2113_p10), [#allocation6], 4294963136 }
  0x65   : > { %1806 = dma.done.wait (%p2114_p11), [#allocation9], 8192   ;;  %p2115_p2 = pmov %p2112_p8 }
  0x66   : > { %v1837_v0 = vmov 0   ;;  %v1495_v1 = vld [vmem:[#allocation5 + $0xe4] ss:$16 sps:$4 sm:$0xff]   ;;  %v1497_v2 = vld [vmem:[#allocation5 + $0xec] ss:$16 sps:$4 sm:$0xff]   ;;  %s1310_s9 = sshll.u32 %s2005_s18, 4 }
  0x67   : > { %1808 = vsyncadd (%p2115_p2), [#allocation9], 4294959104  ;;  %584 = vmatprep.mubr.bf16.mxu0 %v1837_v0  ;;  %625 = vmatprep.mubr.bf16.mxu1 %v1837_v0  ;;  %v1499_v3 = vld [vmem:[#allocation5 + $0xe0] ss:$16 sps:$4 sm:$0xff]   ;;  %v1500_v4 = vld [vmem:[#allocation5 + $0xe8] ss:$16 sps:$4 sm:$0xff]  }
  0x68   : > { %552 = vmatprep.subr.bf16.mxu0 %v1495_v1  ;;  %593 = vmatprep.subr.bf16.mxu1 %v1497_v2  ;;  %v1501_v5 = vld [vmem:[#allocation5 + $0xc4] ss:$16 sps:$4 sm:$0xff]   ;;  %v1503_v6 = vld [vmem:[#allocation5 + $0xcc] ss:$16 sps:$4 sm:$0xff]   ;;  %v1505_v7 = vld [vmem:[#allocation5 + $0xc0] ss:$16 sps:$4 sm:$0xff]  }
  0x69   : > { %553 = vmatpush1.bf16.msra.mxu0 %v1499_v3  ;;  %594 = vmatpush1.bf16.msra.mxu1 %v1500_v4  ;;  %v1506_v8 = vld [vmem:[#allocation5 + $0xc8] ss:$16 sps:$4 sm:$0xff]   ;;  %v1507_v9 = vld [vmem:[#allocation5 + $0xa4] ss:$16 sps:$4 sm:$0xff]   ;;  %v1509_v10 = vld [vmem:[#allocation5 + $0xac] ss:$16 sps:$4 sm:$0xff]  }
  0x6a   : > { %554 = vmatprep.subr.bf16.mxu0 %v1501_v5  ;;  %595 = vmatprep.subr.bf16.mxu1 %v1503_v6  ;;  %v1511_v11 = vld [vmem:[#allocation5 + $0xa0] ss:$16 sps:$4 sm:$0xff]   ;;  %v1512_v12 = vld [vmem:[#allocation5 + $0xa8] ss:$16 sps:$4 sm:$0xff]   ;;  %v1513_v13 = vld [vmem:[#allocation5 + $0x84] ss:$16 sps:$4 sm:$0xff]  }
  0x6b   : > { %v1515_v14 = vld [vmem:[#allocation5 + $0x8c] ss:$16 sps:$4 sm:$0xff]   ;;  %v1517_v15 = vld [vmem:[#allocation5 + $0x80] ss:$16 sps:$4 sm:$0xff]   ;;  %v1518_v16 = vld [vmem:[#allocation5 + $0x88] ss:$16 sps:$4 sm:$0xff]  }
  0x6c   : > { %v1519_v17 = vld [vmem:[#allocation5 + $0x64] ss:$16 sps:$4 sm:$0xff]   ;;  %v1521_v18 = vld [vmem:[#allocation5 + $0x6c] ss:$16 sps:$4 sm:$0xff]   ;;  %v1523_v19 = vld [vmem:[#allocation5 + $0x60] ss:$16 sps:$4 sm:$0xff]  }
  0x6d   : > { %555 = vmatpush1.bf16.msra.mxu0 %v1505_v7  ;;  %596 = vmatpush1.bf16.msra.mxu1 %v1506_v8  ;;  %v1524_v20 = vld [vmem:[#allocation5 + $0x68] ss:$16 sps:$4 sm:$0xff]   ;;  %v1525_v21 = vld [vmem:[#allocation5 + $0x44] ss:$16 sps:$4 sm:$0xff]   ;;  %v1527_v22 = vld [vmem:[#allocation5 + $0x4c] ss:$16 sps:$4 sm:$0xff]  }
  0x6e   : > { %556 = vmatprep.subr.bf16.mxu0 %v1507_v9  ;;  %597 = vmatprep.subr.bf16.mxu1 %v1509_v10  ;;  %v1529_v23 = vld [vmem:[#allocation5 + $0x40] ss:$16 sps:$4 sm:$0xff]   ;;  %v1530_v24 = vld [vmem:[#allocation5 + $0x48] ss:$16 sps:$4 sm:$0xff]   ;;  %v1531_v25 = vld [vmem:[#allocation5 + $0x24] ss:$16 sps:$4 sm:$0xff]  }
  0x6f   : > { %v1533_v26 = vld [vmem:[#allocation5 + $0x2c] ss:$16 sps:$4 sm:$0xff]   ;;  %v1535_v27 = vld [vmem:[#allocation5 + $0x20] ss:$16 sps:$4 sm:$0xff]   ;;  %v1536_v28 = vld [vmem:[#allocation5 + $0x28] ss:$16 sps:$4 sm:$0xff]  }
  0x70   : > { %v1537_v29 = vld [vmem:[#allocation5 + $0x4] ss:$16 sps:$4 sm:$0xff]   ;;  %v1539_v30 = vld [vmem:[#allocation5 + $0xc] ss:$16 sps:$4 sm:$0xff]   ;;  %v1541_v31 = vld [vmem:[#allocation5] ss:$16 sps:$4 sm:$0xff]  }
  0x71   : > { %557 = vmatpush1.bf16.msra.mxu0 %v1511_v11  ;;  %598 = vmatpush1.bf16.msra.mxu1 %v1512_v12  ;;  %v1542_v32 = vld [vmem:[#allocation5 + $0x8] ss:$16 sps:$4 sm:$0xff]   ;;  %v1543_v36 = vld [vmem:[#allocation8 + $0x70] ss:$8 sps:$4 sm:$0xff]   ;;  %v1549_v40 = vld [vmem:[#allocation8 + $0x60] ss:$8 sps:$4 sm:$0xff]  }
  0x72   : > { %558 = vmatprep.subr.bf16.mxu0 %v1513_v13  ;;  %599 = vmatprep.subr.bf16.mxu1 %v1515_v14  ;;  %v1545_v33 = vld [vmem:[#allocation8 + $0x74] ss:$8 sps:$4 sm:$0xff]   ;;  %v1546_v37 = vld [vmem:[#allocation8 + $0x170] ss:$8 sps:$4 sm:$0xff]   ;;  %v1551_v38 = vld [vmem:[#allocation8 + $0x64] ss:$8 sps:$4 sm:$0xff]  }
  0x73   : > { %v1548_v34 = vld [vmem:[#allocation8 + $0x174] ss:$8 sps:$4 sm:$0xff]   ;;  %v1554_v39 = vld [vmem:[#allocation8 + $0x164] ss:$8 sps:$4 sm:$0xff]   ;;  %v1552_v41 = vld [vmem:[#allocation8 + $0x160] ss:$8 sps:$4 sm:$0xff]  }
  0x74   : > { %v337_v35 = vld [vmem:[%s2009_s1] sm:$0xf]  ;;  %v1563_v46 = vld [vmem:[#allocation8 + $0x44] ss:$8 sps:$4 sm:$0xff]   ;;  %v1561_v48 = vld [vmem:[#allocation8 + $0x40] ss:$8 sps:$4 sm:$0xff]  }
  0x75   : > { %559 = vmatpush1.bf16.msra.mxu0 %v1517_v15  ;;  %600 = vmatpush1.bf16.msra.mxu1 %v1518_v16  ;;  %v1557_v42 = vld [vmem:[#allocation8 + $0x54] ss:$8 sps:$4 sm:$0xff]   ;;  %v1555_v44 = vld [vmem:[#allocation8 + $0x50] ss:$8 sps:$4 sm:$0xff]   ;;  %v1566_v47 = vld [vmem:[#allocation8 + $0x144] ss:$8 sps:$4 sm:$0xff]  }
  0x76   : > { %560 = vmatprep.subr.bf16.mxu0 %v1519_v17  ;;  %601 = vmatprep.subr.bf16.mxu1 %v1521_v18  ;;  %v1560_v43 = vld [vmem:[#allocation8 + $0x154] ss:$8 sps:$4 sm:$0xff]   ;;  %v1558_v45 = vld [vmem:[#allocation8 + $0x150] ss:$8 sps:$4 sm:$0xff]   ;;  %v1564_v49 = vld [vmem:[#allocation8 + $0x140] ss:$8 sps:$4 sm:$0xff]  }
  0x77   : > { %v1569_v50 = vld [vmem:[#allocation8 + $0x34] ss:$8 sps:$4 sm:$0xff]   ;;  %v1567_v52 = vld [vmem:[#allocation8 + $0x30] ss:$8 sps:$4 sm:$0xff]   ;;  %v1575_v54 = vld [vmem:[#allocation8 + $0x24] ss:$8 sps:$4 sm:$0xff]  }
  0x78   : > { %v1572_v51 = vld [vmem:[#allocation8 + $0x134] ss:$8 sps:$4 sm:$0xff]   ;;  %v1570_v53 = vld [vmem:[#allocation8 + $0x130] ss:$8 sps:$4 sm:$0xff]   ;;  %v1578_v55 = vld [vmem:[#allocation8 + $0x124] ss:$8 sps:$4 sm:$0xff]  }
  0x79   : > { %561 = vmatpush1.bf16.msra.mxu0 %v1523_v19  ;;  %602 = vmatpush1.bf16.msra.mxu1 %v1524_v20  ;;  %v1573_v56 = vld [vmem:[#allocation8 + $0x20] ss:$8 sps:$4 sm:$0xff]   ;;  %v1581_v58 = vld [vmem:[#allocation8 + $0x14] ss:$8 sps:$4 sm:$0xff]   ;;  %v1579_v60 = vld [vmem:[#allocation8 + $0x10] ss:$8 sps:$4 sm:$0xff]  }
  0x7a   : > { %562 = vmatprep.subr.bf16.mxu0 %v1525_v21  ;;  %603 = vmatprep.subr.bf16.mxu1 %v1527_v22  ;;  %v1576_v57 = vld [vmem:[#allocation8 + $0x120] ss:$8 sps:$4 sm:$0xff]   ;;  %v1584_v59 = vld [vmem:[#allocation8 + $0x114] ss:$8 sps:$4 sm:$0xff]   ;;  %v1582_v61 = vld [vmem:[#allocation8 + $0x110] ss:$8 sps:$4 sm:$0xff]  }
  0x7b   : > { %v1587_v62 = vld [vmem:[#allocation8 + $0x4] ss:$8 sps:$4 sm:$0xff]   ;;  %v1585_v0 = vld [vmem:[#allocation8] ss:$8 sps:$4 sm:$0xff]   ;;  %v1593_v2 = vld [vmem:[#allocation8 + $0xf4] ss:$8 sps:$4 sm:$0xff]  }
  0x7c   : > { %v1590_v63 = vld [vmem:[#allocation8 + $0x104] ss:$8 sps:$4 sm:$0xff]   ;;  %v1588_v1 = vld [vmem:[#allocation8 + $0x100] ss:$8 sps:$4 sm:$0xff]   ;;  %v1596_v3 = vld [vmem:[#allocation8 + $0x1f4] ss:$8 sps:$4 sm:$0xff]  }
  0x7d   : > { %563 = vmatpush1.bf16.msra.mxu0 %v1529_v23  ;;  %604 = vmatpush1.bf16.msra.mxu1 %v1530_v24  ;;  %v1591_v4 = vld [vmem:[#allocation8 + $0xf0] ss:$8 sps:$4 sm:$0xff]   ;;  %v1599_v6 = vld [vmem:[#allocation8 + $0xe4] ss:$8 sps:$4 sm:$0xff]   ;;  %v1597_v8 = vld [vmem:[#allocation8 + $0xe0] ss:$8 sps:$4 sm:$0xff]  }
  0x7e   : > { %564 = vmatprep.subr.bf16.mxu0 %v1531_v25  ;;  %605 = vmatprep.subr.bf16.mxu1 %v1533_v26  ;;  %v1594_v5 = vld [vmem:[#allocation8 + $0x1f0] ss:$8 sps:$4 sm:$0xff]   ;;  %v1602_v7 = vld [vmem:[#allocation8 + $0x1e4] ss:$8 sps:$4 sm:$0xff]   ;;  %v1600_v9 = vld [vmem:[#allocation8 + $0x1e0] ss:$8 sps:$4 sm:$0xff]  }
  0x7f   : > { %v1605_v10 = vld [vmem:[#allocation8 + $0xd4] ss:$8 sps:$4 sm:$0xff]   ;;  %v1603_v12 = vld [vmem:[#allocation8 + $0xd0] ss:$8 sps:$4 sm:$0xff]   ;;  %v1611_v14 = vld [vmem:[#allocation8 + $0xc4] ss:$8 sps:$4 sm:$0xff]  }
  0x80   : > { %v1608_v11 = vld [vmem:[#allocation8 + $0x1d4] ss:$8 sps:$4 sm:$0xff]   ;;  %v1606_v13 = vld [vmem:[#allocation8 + $0x1d0] ss:$8 sps:$4 sm:$0xff]   ;;  %v1614_v15 = vld [vmem:[#allocation8 + $0x1c4] ss:$8 sps:$4 sm:$0xff]  }
  0x81   : > { %565 = vmatpush1.bf16.msra.mxu0 %v1535_v27  ;;  %606 = vmatpush1.bf16.msra.mxu1 %v1536_v28  ;;  %v1609_v16 = vld [vmem:[#allocation8 + $0xc0] ss:$8 sps:$4 sm:$0xff]   ;;  %v1617_v18 = vld [vmem:[#allocation8 + $0xb4] ss:$8 sps:$4 sm:$0xff]   ;;  %v1615_v20 = vld [vmem:[#allocation8 + $0xb0] ss:$8 sps:$4 sm:$0xff]  }
  0x82   : > { %566 = vmatprep.subr.bf16.mxu0 %v1537_v29  ;;  %607 = vmatprep.subr.bf16.mxu1 %v1539_v30  ;;  %v1612_v17 = vld [vmem:[#allocation8 + $0x1c0] ss:$8 sps:$4 sm:$0xff]   ;;  %v1620_v19 = vld [vmem:[#allocation8 + $0x1b4] ss:$8 sps:$4 sm:$0xff]   ;;  %v1618_v21 = vld [vmem:[#allocation8 + $0x1b0] ss:$8 sps:$4 sm:$0xff]  }
  0x83   : > { %v1623_v22 = vld [vmem:[#allocation8 + $0xa4] ss:$8 sps:$4 sm:$0xff]   ;;  %v1621_v24 = vld [vmem:[#allocation8 + $0xa0] ss:$8 sps:$4 sm:$0xff]   ;;  %v1629_v26 = vld [vmem:[#allocation8 + $0x94] ss:$8 sps:$4 sm:$0xff]  }
  0x84   : > { %v1626_v23 = vld [vmem:[#allocation8 + $0x1a4] ss:$8 sps:$4 sm:$0xff]   ;;  %v1624_v25 = vld [vmem:[#allocation8 + $0x1a0] ss:$8 sps:$4 sm:$0xff]   ;;  %v1632_v27 = vld [vmem:[#allocation8 + $0x194] ss:$8 sps:$4 sm:$0xff]  }
  0x85   : > { %567 = vmatpush1.bf16.msra.mxu0 %v1541_v31  ;;  %608 = vmatpush1.bf16.msra.mxu1 %v1542_v32  ;;  %v1627_v28 = vld [vmem:[#allocation8 + $0x90] ss:$8 sps:$4 sm:$0xff]   ;;  %v1633_v30 = vld [vmem:[#allocation8 + $0x80] ss:$8 sps:$4 sm:$0xff]   ;;  %v1635_v31 = vld [vmem:[#allocation8 + $0x84] ss:$8 sps:$4 sm:$0xff]  }
  0x86   : > { %1054 = vmatprep.subr.bf16.mxu0 %v1545_v33  ;;  %1095 = vmatprep.subr.bf16.mxu1 %v1548_v34  ;;  %v1630_v29 = vld [vmem:[#allocation8 + $0x190] ss:$8 sps:$4 sm:$0xff]   ;;  %v1636_v32 = vld [vmem:[#allocation8 + $0x180] ss:$8 sps:$4 sm:$0xff]   ;;  %v1638_v33 = vld [vmem:[#allocation8 + $0x184] ss:$8 sps:$4 sm:$0xff]   ;;  %v372_v34 = vlaneseq }
  0x87   : > { %s1412_s23 = sshll.u32 %s1900_s28, 8  ;;  %s335_s29 = scalar_lea.vmem [#allocation10], %s1310_s9 }
  0x88   : > { %585 = vmatmul.mubr.bf16.vlgmr.msra.gmra.mxu0 %v337_v35  ;;  %626 = vmatmul.mubr.bf16.vlgmr.msra.gmra.mxu1 %v337_v35  ;;  %v373_v35 = vshrl.u32 %v372_v34, 7  ;;  %s1198_s16 = sshll.u32 %s335_s29, 4  ;;  %s2050_s19 = scalar_lea.hbm %s2094_s7, %s1412_s23  ;;  %s1199_s16 = int_to_ptr.vmem [resolvable:$true] %s1198_s16 }
  0x89   : > { %1055 = vmatpush1.bf16.msra.mxu0 %v1543_v36  ;;  %1096 = vmatpush1.bf16.msra.mxu1 %v1546_v37  ;;  %s1184_s22 = scalar_lea.sflag [#allocation4], %s2005_s18  ;;  %s1755_s1 = scalar_lea.vmem %s1199_s16, 256 }
  0x8a   : > { %1056 = vmatprep.subr.bf16.mxu0 %v1551_v38  ;;  %1097 = vmatprep.subr.bf16.mxu1 %v1554_v39  ;;  %v2024_v36 = vsub.s32 0, %v373_v35  ;;  %v382_v37 = vsub.s32 2, %v373_v35  ;;  %v370_v38 = vld [vmem:[#allocation7] sm:$0xf]  ;;  %v2026_v39 = vsub.s32 1, %v373_v35  ;;  %p1756_p4 = scmp.ne.s32.totalorder %s1199_s16, %s1755_s1  ;;  %p2116_p6 = scmp.ne.s32.totalorder %s2108_s21, 0 }
  0x8b   : > { %s1838_s28 = smov [#allocation10]  }
  0x8c   : > { %p1757_p12 = pnand %p1756_p4, %p2116_p6  ;;  %s1759_s2 = sshll.u32 %s1838_s28, 4  ;;  %s1760_s2 = int_to_ptr.vmem [resolvable:$false] %s1759_s2 }
  0x8d   : > { %1057 = vmatpush1.bf16.msra.mxu0 %v1549_v40  ;;  %1098 = vmatpush1.bf16.msra.mxu1 %v1552_v41  ;;  %v386_v40 = vsub.s32 3, %v373_v35  ;;  %v375_v41 = vrot.slane %v370_v38, %v2024_v36  ;;  %s1761_s30 = scalar_lea.vmem %s1760_s2, 512  ;;  %p1762_p5 = scmp.lt.s32.totalorder %s1199_s16, %s1760_s2 }
  0x8e   : > { %1058 = vmatprep.subr.bf16.mxu0 %v1557_v42  ;;  %1099 = vmatprep.subr.bf16.mxu1 %v1560_v43  ;;  %v383_v42 = vrot.slane %v370_v38, %v382_v37  ;;  %p1758_p0 = pneg %p1757_p12  ;;  %p1763_p3 = scmp.lt.s32.totalorder %s1761_s30, %s1755_s1 }
  0x90   : > { %p1764_p7 = por %p1763_p3, %p1762_p5 }
  0x91   : > { %1059 = vmatpush1.bf16.msra.mxu0 %v1555_v44  ;;  %1100 = vmatpush1.bf16.msra.mxu1 %v1558_v45  ;;  %v379_v45 = vrot.slane %v370_v38, %v2026_v39 }
  0x92   : > { %1060 = vmatprep.subr.bf16.mxu0 %v1563_v46  ;;  %1101 = vmatprep.subr.bf16.mxu1 %v1566_v47  ;;  %v387_v46 = vrot.slane %v370_v38, %v386_v40  ;;  %p1765_p9 = pnand %p1764_p7, %p1758_p0 }
  0x95   : > { %1061 = vmatpush1.bf16.msra.mxu0 %v1561_v48  ;;  %1102 = vmatpush1.bf16.msra.mxu1 %v1564_v49 }
  0x96   : > { %1062 = vmatprep.subr.bf16.mxu0 %v1569_v50  ;;  %1103 = vmatprep.subr.bf16.mxu1 %v1572_v51 }
  0x99   : > { %1063 = vmatpush1.bf16.msra.mxu0 %v1567_v52  ;;  %1104 = vmatpush1.bf16.msra.mxu1 %v1570_v53 }
  0x9a   : > { %1064 = vmatprep.subr.bf16.mxu0 %v1575_v54  ;;  %1105 = vmatprep.subr.bf16.mxu1 %v1578_v55 }
  0x9d   : > { %1065 = vmatpush1.bf16.msra.mxu0 %v1573_v56  ;;  %1106 = vmatpush1.bf16.msra.mxu1 %v1576_v57 }
  0x9e   : > { %1066 = vmatprep.subr.bf16.mxu0 %v1581_v58  ;;  %1107 = vmatprep.subr.bf16.mxu1 %v1584_v59 }
  0xa1   : > { %1067 = vmatpush1.bf16.msra.mxu0 %v1579_v60  ;;  %1108 = vmatpush1.bf16.msra.mxu1 %v1582_v61 }
  0xa2   : > { %1068 = vmatprep.subr.bf16.mxu0 %v1587_v62  ;;  %1109 = vmatprep.subr.bf16.mxu1 %v1590_v63 }
  0xa5   : > { %1069 = vmatpush1.bf16.msra.mxu0 %v1585_v0  ;;  %1110 = vmatpush1.bf16.msra.mxu1 %v1588_v1 }
  0xa6   : > { %1070 = vmatprep.subr.bf16.mxu0 %v1593_v2  ;;  %1111 = vmatprep.subr.bf16.mxu1 %v1596_v3 }
  0xa9   : > { %1071 = vmatpush2.bf16.msra.mxu0 %v1591_v4  ;;  %1112 = vmatpush2.bf16.msra.mxu1 %v1594_v5 }
  0xaa   : > { %1072 = vmatprep.subr.bf16.mxu0 %v1599_v6  ;;  %1113 = vmatprep.subr.bf16.mxu1 %v1602_v7 }
  0xad   : > { %1073 = vmatpush2.bf16.msra.mxu0 %v1597_v8  ;;  %1114 = vmatpush2.bf16.msra.mxu1 %v1600_v9 }
  0xae   : > { %1074 = vmatprep.subr.bf16.mxu0 %v1605_v10  ;;  %1115 = vmatprep.subr.bf16.mxu1 %v1608_v11 }
  0xb1   : > { %1075 = vmatpush2.bf16.msra.mxu0 %v1603_v12  ;;  %1116 = vmatpush2.bf16.msra.mxu1 %v1606_v13 }
  0xb2   : > { %1076 = vmatprep.subr.bf16.mxu0 %v1611_v14  ;;  %1117 = vmatprep.subr.bf16.mxu1 %v1614_v15 }
  0xb5   : > { %1077 = vmatpush2.bf16.msra.mxu0 %v1609_v16  ;;  %1118 = vmatpush2.bf16.msra.mxu1 %v1612_v17  ;;  %v722_v17 = vld [vmem:[%s2091_s4] sm:$0x3] }
  0xb6   : > { %1078 = vmatprep.subr.bf16.mxu0 %v1617_v18  ;;  %1119 = vmatprep.subr.bf16.mxu1 %v1620_v19  ;;  %v727_v18 = vrot.slane %v722_v17, %v2024_v36  ;;  %v731_v19 = vrot.slane %v722_v17, %v2026_v39 }
  0xb9   : > { %1079 = vmatpush2.bf16.msra.mxu0 %v1615_v20  ;;  %1120 = vmatpush2.bf16.msra.mxu1 %v1618_v21 }
  0xba   : > { %1080 = vmatprep.subr.bf16.mxu0 %v1623_v22  ;;  %1121 = vmatprep.subr.bf16.mxu1 %v1626_v23 }
  0xbd   : > { %1081 = vmatpush2.bf16.msra.mxu0 %v1621_v24  ;;  %1122 = vmatpush2.bf16.msra.mxu1 %v1624_v25 }
  0xbe   : > { %1082 = vmatprep.subr.bf16.mxu0 %v1629_v26  ;;  %1123 = vmatprep.subr.bf16.mxu1 %v1632_v27 }
  0xc1   : > { %1083 = vmatpush2.bf16.msra.mxu0 %v1627_v28  ;;  %1124 = vmatpush2.bf16.msra.mxu1 %v1630_v29 }
  0xc2   : > { %1084 = vmatprep.subr.bf16.mxu0 %v1635_v31  ;;  %1125 = vmatprep.subr.bf16.mxu1 %v1638_v33 }
  0xc5   : > { %1085 = vmatpush2.bf16.msra.mxu0 %v1633_v30  ;;  %1126 = vmatpush2.bf16.msra.mxu1 %v1636_v32 }
 0x148   : > { %v586_v43 = vpop.f32.mrf.mxu0  ;;  %v627_v44 = vpop.f32.mrf.mxu1 }
 0x149   : > { %v587_v47 = vadd.f32 %v586_v43, %v375_v41  ;;  %v628_v48 = vadd.f32 %v627_v44, %v383_v42 }
 0x14a   : > { %v588_v49 = vpop.f32.mrf.mxu0  ;;  %v629_v50 = vpop.f32.mrf.mxu1 }
 0x14b   : > { %v638_v51 = vmul.f32 0.70710677, %v587_v47  ;;  %v640_v52 = vmul.f32 0.70710677, %v628_v48  ;;  %v589_v53 = vadd.f32 %v588_v49, %v379_v45  ;;  %v630_v54 = vadd.f32 %v629_v50, %v387_v46  ;;  %v1153_v45 = vld [vmem:[%s2092_s5] sm:$0x3] }
 0x14c   : > { %v590_v55 = vpop.f32.mrf.mxu0  ;;  %v631_v56 = vpop.f32.mrf.mxu1  ;;  %v634_v2 = vmul.f32 0.5, %v587_v47  ;;  %v636_v4 = vmul.f32 0.5, %v628_v48  ;;  %v1167_v46 = vld [vmem:[%s2093_s6] sm:$0x3]  ;;  %v1158_v47 = vrot.slane %v1153_v45, %v2024_v36  ;;  %v1162_v48 = vrot.slane %v1153_v45, %v2026_v39 }
 0x14d   : > { %1639 = verf.f32 %v638_v51  ;;  %v639_v57 = vmul.f32 0.70710677, %v589_v53  ;;  %v641_v60 = vmul.f32 0.70710677, %v630_v54  ;;  %v635_v5 = vmul.f32 0.5, %v589_v53 }
 0x14e   : > { %1641 = verf.f32 %v640_v52  ;;  %v591_v58 = vpop.f32.mrf.mxu0  ;;  %v632_v59 = vpop.f32.mrf.mxu1  ;;  %v637_v8 = vmul.f32 0.5, %v630_v54  ;;  %v1172_v52 = vrot.slane %v1167_v46, %v2024_v36  ;;  %v1176_v53 = vrot.slane %v1167_v46, %v2026_v39 }
 0x14f   : > { %1643 = verf.f32 %v639_v57 }
 0x150   : > { %1645 = verf.f32 %v641_v60 }
 0x15a   : > { %v1640_v61 = vpop.eup %1639 }
 0x15b   : > { %v1642_v62 = vpop.eup %1641  ;;  %v646_v63 = vadd.f32 1.0, %v1640_v61 }
 0x15c   : > { %v648_v0 = vadd.f32 1.0, %v1642_v62  ;;  %v1644_v1 = vpop.eup %1643 }
 0x15d   : > { %v1646_v3 = vpop.eup %1645  ;;  %v647_v6 = vadd.f32 1.0, %v1644_v1  ;;  %v650_v7 = vmul.f32 %v646_v63, %v634_v2 }
 0x15e   : > { %v649_v9 = vadd.f32 1.0, %v1646_v3  ;;  %v652_v10 = vmul.f32 %v648_v0, %v636_v4 }
 0x15f   : > { %v651_v11 = vmul.f32 %v647_v6, %v635_v5  ;;  %v654_v14 = vpack.c.bf16 %v650_v7, %v650_v7 }
 0x160   : > { %v653_v12 = vmul.f32 %v649_v9, %v637_v8  ;;  %v656_v16 = vpack.c.bf16 %v652_v10, %v652_v10 }
 0x161   : > { %v655_v13 = vpack.c.bf16 %v651_v11, %v651_v11 }
 0x162   : > { %v657_v15 = vpack.c.bf16 %v653_v12, %v653_v12 }
 0x163   : > { %1086 = vmatprep.mubr.bf16.mxu0 %v655_v13 }
 0x164   : > { %1127 = vmatprep.mubr.bf16.mxu1 %v657_v15  ;;  %1087 = vmatmul.mubr.bf16.vlgmr.msra.gmra.mxu0 %v654_v14 }
 0x165   : > { %1128 = vmatmul.mubr.bf16.vlgmr.msra.gmra.mxu1 %v656_v16 }
 0x224   : > { %v1088_v20 = vpop.f32.mrf.mxu0 }
 0x225   : > { %v1089_v21 = vadd.f32 %v1088_v20, %v727_v18  ;;  %v1129_v22 = vpop.f32.mrf.mxu1 }
 0x226   : > { %v1090_v23 = vpop.f32.mrf.mxu0 }
 0x227   : > { %v1091_v24 = vadd.f32 %v1090_v23, %v731_v19  ;;  %v1131_v25 = vpop.f32.mrf.mxu1  ;;  %v1130_v27 = vadd.f32 %v1129_v22, %v1089_v21 }
 0x228   : > { %v1092_v26 = vpop.f32.mrf.mxu0 }
 0x229   : > { %v1132_v28 = vadd.f32 %v1131_v25, %v1091_v24  ;;  %v1133_v29 = vpop.f32.mrf.mxu1 }
 0x22a   : > { %v1093_v30 = vpop.f32.mrf.mxu0 }
 0x22b   : > { %v1134_v31 = vpop.f32.mrf.mxu1  ;;  %v1136_v32 = vadd.f32 %v1132_v28, %v1130_v27 }
 0x22d   : > { %1137 = vadd.xlane.f32.xlu0 %v1136_v32 }
 0x2b6   : > { %v1138_v33 = vpop.xlane.xlu0 %1137 }
 0x2b7   : > { %v1140_v34 = vmul.f32 0.00390625, %v1138_v33 }
 0x2b9   : > { %v1141_v35 = vsub.f32 %v1130_v27, %v1140_v34  ;;  %v1142_v37 = vsub.f32 %v1132_v28, %v1140_v34 }
 0x2bb   : > { %v1143_v38 = vmul.f32 %v1141_v35, %v1141_v35  ;;  %v1144_v40 = vmul.f32 %v1142_v37, %v1142_v37 }
 0x2bd   : > { %v1145_v41 = vadd.f32 %v1144_v40, %v1143_v38 }
 0x2bf   : > { %1146 = vadd.xlane.f32.xlu0 %v1145_v41 }
 0x348   : > { %v1147_v42 = vpop.xlane.xlu0 %1146 }
 0x349   : > { %v1148_v43 = vmul.f32 0.00390625, %v1147_v42 }
 0x34b   : > { %v1149_v44 = vadd.f32 1e-05, %v1148_v43 }
 0x34d   : > { %1647 = vrsqrt.f32 %v1149_v44 }
 0x35a   : > { %v1648_v49 = vpop.eup %1647 }
 0x35b   : > { %v1151_v50 = vmul.f32 %v1648_v49, %v1141_v35  ;;  %v1152_v51 = vmul.f32 %v1648_v49, %v1142_v37 }
 0x35d   : > { %v1165_v54 = vmul.f32 %v1158_v47, %v1151_v50  ;;  %v1166_v55 = vmul.f32 %v1162_v48, %v1152_v51 }
 0x35f   : > { %v1179_v56 = vadd.f32 %v1172_v52, %v1165_v54  ;;  %v1180_v57 = vadd.f32 %v1176_v53, %v1166_v55 }
 0x361   : > { %1181 = vst [vmem:[%s335_s29] sm:$0xff] %v1179_v56  ;;  %1182 = vst [vmem:[%s335_s29 + $0x8] sm:$0xff] %v1180_v57 }
 0x362   : > { %1768 = shalt.err (!%p1765_p9)
}
 0x363   : > { %s1769_s9 = scalar_lea.hbm %s2050_s19, 256  ;;  %s1773_s13 = scalar_lea.hbm %s2094_s7, 512 }
 0x364   : > { %p1770_p13 = scmp.ne.s32.totalorder %s2050_s19, %s1769_s9  ;;  %p1774_p10 = scmp.lt.s32.totalorder %s2050_s19, %s2094_s7 }
 0x365   : > { %p1775_p11 = scmp.lt.s32.totalorder %s1773_s13, %s1769_s9 }
 0x366   : > { %p1771_p1 = pnand %p1770_p13, %p2116_p6 }
 0x367   : > { %p1776_p2 = por %p1775_p11, %p1774_p10 }
 0x368   : > { %p1772_p8 = pneg %p1771_p1 }
 0x36a   : > { %p1777_p4 = pnand %p1776_p2, %p1772_p8 }
 0x36c   : > { %1780 = shalt.err (!%p1777_p4)
}
 0x36d   : > { %1427 = dma.vmem_to_hbm [thread:$0]  (%p2116_p6), %s1199_s16, 256, %s2050_s19, %s1184_s22  }
 0x36e PF: > { %s1210_s23 = sand.u32 1, %s1815_s24   ;;  %p2117_p12 = scmp.ne.s32.totalorder %s2102_s8, 0 }
 0x36f   : > { %p2118_p0 = scmp.ge.s32.totalorder %s1827_s27, 2  ;;  %s1211_s29 = scalar_lea.sflag [#allocation4], %s1210_s23 }
 0x371   : > { %p1444_p5 = pnand %p2118_p0, %p2117_p12 }
 0x373   : > { %p1445_p3 = pneg %p1444_p5 }
 0x375   : > { %1810 = dma.done.wait (%p1445_p3), %s1211_s29, 256  }
 0x376   : > { %1812 = vsyncadd (%p1445_p3), %s1211_s29, 4294967040  ;;  %p22_p7 = scmp.ge.s32.totalorder %s1959_s17, 4   ;;  %s2119_s24 = smov %s1819_s25 }
 0x377   : > { %s2120_s25 = smov %s1823_s26  ;;  %s2121_s26 = smov %s1969_s20 }
 0x378   : > { %s2122_s27 = smov %s1959_s17  ;;  %24 = sbr.rel (!%p22_p7) target bundleno = 10 (0xa), region = 105 }
 0x37d   :  { %1216 = vsyncpa [#allocation3], 1 }
 0x37e   :  { %1218 = vsyncpa [#allocation3 + $0x1], 1 }
 0x37f   :  { %1219 = vsyncpa [#allocation6], 1 }
 0x380   :  { %1220 = vsyncpa [#allocation9], 1 }
 0x381   :  { %1221 = vsyncpa [#allocation4], 1 }
 0x382   :  { %1223 = vsyncpa [#allocation4 + $0x1], 1 }

</bundles_post_ra>
